<compile_context>
chip_gen: v7x
topology: tpu7x:2x2x1
jax: 0.10.0
libtpu: 0.0.40
codegen_flags: <defaults>
</compile_context>

<pallas_src>
import functools

import jax
import jax.numpy as jnp
from jax.experimental import pallas as pl
from jax.experimental.pallas import tpu as pltpu


def _ppeg_kernel(x_ref, w_ref, b_ref, out_ref, pad_ref):
    """One (batch, channel-block) tile per grid step.

    x_ref   : (1, H, W, Cb)      unpadded NHWC feature tile
    w_ref   : (49, Cb)           merged depthwise taps (7x7 + 5x5 + 3x3 + identity),
                                 row t = (dh, dw) with t = dh*7 + dw
    b_ref   : (1, 1, Cb)         merged bias (b7 + b5 + b3), float32
    out_ref : (1, H, W, Cb)
    pad_ref : (H+6, W+6, Cb)     VMEM halo scratch (zero padding folded in-kernel)
    """
    H = out_ref.shape[1]
    W = out_ref.shape[2]

    # --- Fold the 'same' zero padding into the kernel: zero the halo scratch
    #     and copy the tile into its interior.  Re-done every grid step so it
    #     is safe under megacore grid partitioning (scratch is per-core). ---
    pad_ref[...] = jnp.zeros_like(pad_ref)
    pad_ref[3:3 + H, 3:3 + W, :] = x_ref[0].astype(pad_ref.dtype)

    w = w_ref[...]          # (49, Cb) merged taps, loop-invariant

    # 4 independent partial accumulators -> 4 parallel VALU dependence chains.
    # Accumulation is float32; tap multiplies stay in the activation dtype
    # (bf16 on v6e/v7x halves slab footprint and VALU work; f32 unchanged).
    accs = [None, None, None, None]
    t = 0
    # dw-outer / dh-inner: only ONE column-shifted slab is live at a time.
    # The sublane-misaligned slice happens 7x per step (once per dw); the
    # per-tap slice below is on the cheap leading (row) axis.
    for dw in range(7):
        slab = pad_ref[:, dw:dw + W, :]                 # (H+6, W, Cb)
        for dh in range(7):
            term = slab[dh:dh + H, :, :] * w[dh * 7 + dw, :]
            j = t % 4
            if accs[j] is None:
                accs[j] = term.astype(jnp.float32)
            else:
                accs[j] = accs[j] + term                # promotes term to f32
            t += 1

    acc = (accs[0] + accs[1]) + (accs[2] + accs[3])
    acc = acc + b_ref[...]                              # (1,1,Cb) broadcast, f32
    out_ref[0] = acc.astype(out_ref.dtype)


@functools.partial(jax.jit, static_argnames=("H", "W"))
def ppeg_forward(x, H, W, w7, b7, w5, b5, w3, b3):
    """x: (B, 1+H*W, C) -> (B, 1+H*W, C)."""
    B, N, C = x.shape
    assert N == 1 + H * W

    cls_token = x[:, :1, :]                       # (B, 1, C)
    feat = x[:, 1:, :].reshape(B, H, W, C)        # NHWC image (layout glue)

    # --- Merge the three depthwise kernels + identity residual into one
    #     exact 7x7 tap set (same cross-correlation math, fp reorder only). ---
    w_comb = w7.astype(jnp.float32)
    w_comb = w_comb.at[1:6, 1:6, :].add(w5.astype(jnp.float32))   # 5x5, pad 2
    w_comb = w_comb.at[2:5, 2:5, :].add(w3.astype(jnp.float32))   # 3x3, pad 1
    w_comb = w_comb.at[3, 3, :].add(1.0)                          # identity residual
    b_comb = (b7 + b5 + b3).astype(jnp.float32).reshape(1, 1, C)

    # Lane-dense channel blocking: pad C up to the next multiple of 128 so the
    # output last dim always takes the unmasked-store path.  Padded channels
    # carry zero weights/bias/inputs and are sliced off afterwards.
    LANES = 128
    Cpad = ((C + LANES - 1) // LANES) * LANES
    if Cpad != C:
        feat = jnp.pad(feat, ((0, 0), (0, 0), (0, 0), (0, Cpad - C)))
        w_comb = jnp.pad(w_comb, ((0, 0), (0, 0), (0, Cpad - C)))
        b_comb = jnp.pad(b_comb, ((0, 0), (0, 0), (0, Cpad - C)))
    Cb = LANES
    n_cb = Cpad // Cb

    # Tap multiplies run in the activation dtype (bf16 wins on v6e/v7x VALU;
    # f32 path is unchanged and exact vs the previous version).
    cdtype = x.dtype
    feat = feat.astype(cdtype)
    w_flat = w_comb.reshape(49, Cpad).astype(cdtype)   # row t = (dh*7 + dw)

    Hp, Wp = H + 6, W + 6

    # TODO(synk): the cls-token slice/reshape and final concatenate are still
    # wrapper-side HBM passes; folding them into the kernel needs sublane-
    # offset-1 loads/stores on the token axis and a (H,W,Cb)<->(H*W,Cb)
    # in-kernel reshape that only stays relayout-free when W % 8 == 0.
    # TODO(synk): add a haloed row-blocked grid axis over H for v7x megacore
    # when B * (C/128) < 2 or H*W is very large; with the default dim=512 the
    # channel axis already provides >= 4 parallel grid steps.
    y = pl.pallas_call(
        _ppeg_kernel,
        out_shape=jax.ShapeDtypeStruct((B, H, W, Cpad), x.dtype),
        grid=(B, n_cb),
        in_specs=[
            pl.BlockSpec((1, H, W, Cb), lambda b, c: (b, 0, 0, c)),
            pl.BlockSpec((49, Cb), lambda b, c: (0, c)),
            pl.BlockSpec((1, 1, Cb), lambda b, c: (0, 0, c)),
        ],
        out_specs=pl.BlockSpec((1, H, W, Cb), lambda b, c: (b, 0, 0, c)),
        scratch_shapes=[pltpu.VMEM((Hp, Wp, Cb), cdtype)],
        compiler_params=pltpu.CompilerParams(
            dimension_semantics=("parallel", "parallel"),
            vmem_limit_bytes=48 * 1024 * 1024),
    )(feat, w_flat, b_comb)

    if Cpad != C:
        y = y[..., :C]
    y_seq = y.reshape(B, H * W, C)
    return jnp.concatenate([cls_token, y_seq], axis=1)


def _reference(x, H, W, w7, b7, w5, b5, w3, b3):
    """Pure-JAX reference (unmerged convs, same cross-correlation math)."""
    B, N, C = x.shape
    cls_token = x[:, :1, :]
    feat = x[:, 1:, :].reshape(B, H, W, C)
    xpad = jnp.pad(feat, ((0, 0), (3, 3), (3, 3), (0, 0)))

    acc = feat + (b7 + b5 + b3)[None, None, None, :]
    for dh in range(7):
        for dw in range(7):
            acc = acc + xpad[:, dh:dh + H, dw:dw + W, :] * w7[dh, dw, :]
    for dh in range(5):
        for dw in range(5):
            acc = acc + xpad[:, 1 + dh:1 + dh + H, 1 + dw:1 + dw + W, :] * w5[dh, dw, :]
    for dh in range(3):
        for dw in range(3):
            acc = acc + xpad[:, 2 + dh:2 + dh + H, 2 + dw:2 + dw + W, :] * w3[dh, dw, :]
    return jnp.concatenate([cls_token, acc.reshape(B, H * W, C)], axis=1)


if __name__ == "__main__":
    # Small, deterministic config: dim (C) = 128 so channels fill full lanes.
    B, C, H, W = 2, 128, 8, 8
    N = 1 + H * W

    key = jax.random.PRNGKey(0)
    kx, k7, kb7, k5, kb5, k3, kb3 = jax.random.split(key, 7)

    x = jax.random.normal(kx, (B, N, C), dtype=jnp.float32)

    # Depthwise conv params (torch shape would be (C,1,K,K); we store (K,K,C)).
    w7 = jax.random.normal(k7, (7, 7, C), dtype=jnp.float32) * 0.05
    b7 = jax.random.normal(kb7, (C,), dtype=jnp.float32) * 0.05
    w5 = jax.random.normal(k5, (5, 5, C), dtype=jnp.float32) * 0.05
    b5 = jax.random.normal(kb5, (C,), dtype=jnp.float32) * 0.05
    w3 = jax.random.normal(k3, (3, 3, C), dtype=jnp.float32) * 0.05
    b3 = jax.random.normal(kb3, (C,), dtype=jnp.float32) * 0.05

    out = ppeg_forward(x, H, W, w7, b7, w5, b5, w3, b3)
    out = jax.block_until_ready(out)

    ref = _reference(x, H, W, w7, b7, w5, b5, w3, b3)
    assert out.shape == (B, N, C)
    assert jnp.allclose(out, ref, atol=1e-4, rtol=1e-4)

    print("KERNEL_OK")
</pallas_src>

<mosaic_0001>
module attributes {stable_mosaic.version = 11 : i64} {
  func.func @_ppeg_kernel(%arg0: i32, %arg1: i32, %arg2: memref<1x8x8x128xf32, #tpu.memory_space<vmem>>, %arg3: memref<49x128xf32, #tpu.memory_space<vmem>>, %arg4: memref<1x1x128xf32, #tpu.memory_space<vmem>>, %arg5: memref<1x8x8x128xf32, #tpu.memory_space<vmem>>, %arg6: memref<14x14x128xf32, #tpu.memory_space<vmem>>) attributes {dimension_semantics = [#tpu.dimension_semantics<parallel>, #tpu.dimension_semantics<parallel>], iteration_bounds = array<i64: 2, 1>, scalar_prefetch = 0 : i64, scratch_operands = 1 : i64, tpu.core_type = #tpu.core_type<tc>, window_params = [{transform_indices = @transform_0, window_bounds = array<i64: 1, 8, 8, 128>}, {transform_indices = @transform_1, window_bounds = array<i64: 49, 128>}, {transform_indices = @transform_2, window_bounds = array<i64: 1, 1, 128>}, {transform_indices = @transform_3, window_bounds = array<i64: 1, 8, 8, 128>}]} {
    %cst = arith.constant 0.000000e+00 : f32
    %0 = vector.broadcast %cst : f32 to vector<14x14x128xf32>
    %c0 = arith.constant 0 : index
    %c0_0 = arith.constant 0 : index
    %c0_1 = arith.constant 0 : index
    %1 = vector.load %arg6[%c0, %c0_0, %c0_1] : memref<14x14x128xf32, #tpu.memory_space<vmem>>, vector<14x14x128xf32>
    tpu.vector_store %arg6[%c0, %c0_0, %c0_1], %0 {strides = array<i32>} : memref<14x14x128xf32, #tpu.memory_space<vmem>>, vector<14x14x128xf32>,
    %c0_2 = arith.constant 0 : index
    %c0_3 = arith.constant 0 : index
    %c0_4 = arith.constant 0 : index
    %c0_5 = arith.constant 0 : index
    %2 = vector.load %arg2[%c0_2, %c0_3, %c0_4, %c0_5] : memref<1x8x8x128xf32, #tpu.memory_space<vmem>>, vector<1x8x8x128xf32>
    %3 = vector.shape_cast %2 : vector<1x8x8x128xf32> to vector<8x8x128xf32>
    %c3 = arith.constant 3 : index
    %c3_6 = arith.constant 3 : index
    %c0_7 = arith.constant 0 : index
    %4 = vector.load %arg6[%c3, %c3_6, %c0_7] : memref<14x14x128xf32, #tpu.memory_space<vmem>>, vector<8x8x128xf32>
    tpu.vector_store %arg6[%c3, %c3_6, %c0_7], %3 {strides = array<i32>} : memref<14x14x128xf32, #tpu.memory_space<vmem>>, vector<8x8x128xf32>,
    %c0_8 = arith.constant 0 : index
    %c0_9 = arith.constant 0 : index
    %5 = vector.load %arg3[%c0_8, %c0_9] : memref<49x128xf32, #tpu.memory_space<vmem>>, vector<49x128xf32>
    %c0_10 = arith.constant 0 : index
    %c0_11 = arith.constant 0 : index
    %c0_12 = arith.constant 0 : index
    %6 = vector.load %arg6[%c0_10, %c0_11, %c0_12] : memref<14x14x128xf32, #tpu.memory_space<vmem>>, vector<14x8x128xf32>
    %7 = vector.extract_strided_slice %6 {offsets = [0, 0, 0], sizes = [8, 8, 128], strides = [1, 1, 1]} : vector<14x8x128xf32> to vector<8x8x128xf32>
    %8 = vector.extract_strided_slice %5 {offsets = [0, 0], sizes = [1, 128], strides = [1, 1]} : vector<49x128xf32> to vector<1x128xf32>
    %9 = vector.shape_cast %8 : vector<1x128xf32> to vector<128xf32>
    %10 = vector.shape_cast %9 : vector<128xf32> to vector<1x1x128xf32>
    %11 = vector.broadcast %10 : vector<1x1x128xf32> to vector<8x8x128xf32>
    %12 = arith.mulf %7, %11 : vector<8x8x128xf32>
    %13 = vector.extract_strided_slice %6 {offsets = [1, 0, 0], sizes = [8, 8, 128], strides = [1, 1, 1]} : vector<14x8x128xf32> to vector<8x8x128xf32>
    %14 = vector.extract_strided_slice %5 {offsets = [7, 0], sizes = [1, 128], strides = [1, 1]} : vector<49x128xf32> to vector<1x128xf32>
    %15 = vector.shape_cast %14 : vector<1x128xf32> to vector<128xf32>
    %16 = vector.shape_cast %15 : vector<128xf32> to vector<1x1x128xf32>
    %17 = vector.broadcast %16 : vector<1x1x128xf32> to vector<8x8x128xf32>
    %18 = arith.mulf %13, %17 : vector<8x8x128xf32>
    %19 = vector.extract_strided_slice %6 {offsets = [2, 0, 0], sizes = [8, 8, 128], strides = [1, 1, 1]} : vector<14x8x128xf32> to vector<8x8x128xf32>
    %20 = vector.extract_strided_slice %5 {offsets = [14, 0], sizes = [1, 128], strides = [1, 1]} : vector<49x128xf32> to vector<1x128xf32>
    %21 = vector.shape_cast %20 : vector<1x128xf32> to vector<128xf32>
    %22 = vector.shape_cast %21 : vector<128xf32> to vector<1x1x128xf32>
    %23 = vector.broadcast %22 : vector<1x1x128xf32> to vector<8x8x128xf32>
    %24 = arith.mulf %19, %23 : vector<8x8x128xf32>
    %25 = vector.extract_strided_slice %6 {offsets = [3, 0, 0], sizes = [8, 8, 128], strides = [1, 1, 1]} : vector<14x8x128xf32> to vector<8x8x128xf32>
    %26 = vector.extract_strided_slice %5 {offsets = [21, 0], sizes = [1, 128], strides = [1, 1]} : vector<49x128xf32> to vector<1x128xf32>
    %27 = vector.shape_cast %26 : vector<1x128xf32> to vector<128xf32>
    %28 = vector.shape_cast %27 : vector<128xf32> to vector<1x1x128xf32>
    %29 = vector.broadcast %28 : vector<1x1x128xf32> to vector<8x8x128xf32>
    %30 = arith.mulf %25, %29 : vector<8x8x128xf32>
    %31 = vector.extract_strided_slice %6 {offsets = [4, 0, 0], sizes = [8, 8, 128], strides = [1, 1, 1]} : vector<14x8x128xf32> to vector<8x8x128xf32>
    %32 = vector.extract_strided_slice %5 {offsets = [28, 0], sizes = [1, 128], strides = [1, 1]} : vector<49x128xf32> to vector<1x128xf32>
    %33 = vector.shape_cast %32 : vector<1x128xf32> to vector<128xf32>
    %34 = vector.shape_cast %33 : vector<128xf32> to vector<1x1x128xf32>
    %35 = vector.broadcast %34 : vector<1x1x128xf32> to vector<8x8x128xf32>
    %36 = arith.mulf %31, %35 : vector<8x8x128xf32>
    %37 = arith.addf %12, %36 : vector<8x8x128xf32>
    %38 = vector.extract_strided_slice %6 {offsets = [5, 0, 0], sizes = [8, 8, 128], strides = [1, 1, 1]} : vector<14x8x128xf32> to vector<8x8x128xf32>
    %39 = vector.extract_strided_slice %5 {offsets = [35, 0], sizes = [1, 128], strides = [1, 1]} : vector<49x128xf32> to vector<1x128xf32>
    %40 = vector.shape_cast %39 : vector<1x128xf32> to vector<128xf32>
    %41 = vector.shape_cast %40 : vector<128xf32> to vector<1x1x128xf32>
    %42 = vector.broadcast %41 : vector<1x1x128xf32> to vector<8x8x128xf32>
    %43 = arith.mulf %38, %42 : vector<8x8x128xf32>
    %44 = arith.addf %18, %43 : vector<8x8x128xf32>
    %45 = vector.extract_strided_slice %6 {offsets = [6, 0, 0], sizes = [8, 8, 128], strides = [1, 1, 1]} : vector<14x8x128xf32> to vector<8x8x128xf32>
    %46 = vector.extract_strided_slice %5 {offsets = [42, 0], sizes = [1, 128], strides = [1, 1]} : vector<49x128xf32> to vector<1x128xf32>
    %47 = vector.shape_cast %46 : vector<1x128xf32> to vector<128xf32>
    %48 = vector.shape_cast %47 : vector<128xf32> to vector<1x1x128xf32>
    %49 = vector.broadcast %48 : vector<1x1x128xf32> to vector<8x8x128xf32>
    %50 = arith.mulf %45, %49 : vector<8x8x128xf32>
    %51 = arith.addf %24, %50 : vector<8x8x128xf32>
    %c0_13 = arith.constant 0 : index
    %c1 = arith.constant 1 : index
    %c0_14 = arith.constant 0 : index
    %52 = vector.load %arg6[%c0_13, %c1, %c0_14] : memref<14x14x128xf32, #tpu.memory_space<vmem>>, vector<14x8x128xf32>
    %53 = vector.extract_strided_slice %52 {offsets = [0, 0, 0], sizes = [8, 8, 128], strides = [1, 1, 1]} : vector<14x8x128xf32> to vector<8x8x128xf32>
    %54 = vector.extract_strided_slice %5 {offsets = [1, 0], sizes = [1, 128], strides = [1, 1]} : vector<49x128xf32> to vector<1x128xf32>
    %55 = vector.shape_cast %54 : vector<1x128xf32> to vector<128xf32>
    %56 = vector.shape_cast %55 : vector<128xf32> to vector<1x1x128xf32>
    %57 = vector.broadcast %56 : vector<1x1x128xf32> to vector<8x8x128xf32>
    %58 = arith.mulf %53, %57 : vector<8x8x128xf32>
    %59 = arith.addf %30, %58 : vector<8x8x128xf32>
    %60 = vector.extract_strided_slice %52 {offsets = [1, 0, 0], sizes = [8, 8, 128], strides = [1, 1, 1]} : vector<14x8x128xf32> to vector<8x8x128xf32>
    %61 = vector.extract_strided_slice %5 {offsets = [8, 0], sizes = [1, 128], strides = [1, 1]} : vector<49x128xf32> to vector<1x128xf32>
    %62 = vector.shape_cast %61 : vector<1x128xf32> to vector<128xf32>
    %63 = vector.shape_cast %62 : vector<128xf32> to vector<1x1x128xf32>
    %64 = vector.broadcast %63 : vector<1x1x128xf32> to vector<8x8x128xf32>
    %65 = arith.mulf %60, %64 : vector<8x8x128xf32>
    %66 = arith.addf %37, %65 : vector<8x8x128xf32>
    %67 = vector.extract_strided_slice %52 {offsets = [2, 0, 0], sizes = [8, 8, 128], strides = [1, 1, 1]} : vector<14x8x128xf32> to vector<8x8x128xf32>
    %68 = vector.extract_strided_slice %5 {offsets = [15, 0], sizes = [1, 128], strides = [1, 1]} : vector<49x128xf32> to vector<1x128xf32>
    %69 = vector.shape_cast %68 : vector<1x128xf32> to vector<128xf32>
    %70 = vector.shape_cast %69 : vector<128xf32> to vector<1x1x128xf32>
    %71 = vector.broadcast %70 : vector<1x1x128xf32> to vector<8x8x128xf32>
    %72 = arith.mulf %67, %71 : vector<8x8x128xf32>
    %73 = arith.addf %44, %72 : vector<8x8x128xf32>
    %74 = vector.extract_strided_slice %52 {offsets = [3, 0, 0], sizes = [8, 8, 128], strides = [1, 1, 1]} : vector<14x8x128xf32> to vector<8x8x128xf32>
    %75 = vector.extract_strided_slice %5 {offsets = [22, 0], sizes = [1, 128], strides = [1, 1]} : vector<49x128xf32> to vector<1x128xf32>
    %76 = vector.shape_cast %75 : vector<1x128xf32> to vector<128xf32>
    %77 = vector.shape_cast %76 : vector<128xf32> to vector<1x1x128xf32>
    %78 = vector.broadcast %77 : vector<1x1x128xf32> to vector<8x8x128xf32>
    %79 = arith.mulf %74, %78 : vector<8x8x128xf32>
    %80 = arith.addf %51, %79 : vector<8x8x128xf32>
    %81 = vector.extract_strided_slice %52 {offsets = [4, 0, 0], sizes = [8, 8, 128], strides = [1, 1, 1]} : vector<14x8x128xf32> to vector<8x8x128xf32>
    %82 = vector.extract_strided_slice %5 {offsets = [29, 0], sizes = [1, 128], strides = [1, 1]} : vector<49x128xf32> to vector<1x128xf32>
    %83 = vector.shape_cast %82 : vector<1x128xf32> to vector<128xf32>
    %84 = vector.shape_cast %83 : vector<128xf32> to vector<1x1x128xf32>
    %85 = vector.broadcast %84 : vector<1x1x128xf32> to vector<8x8x128xf32>
    %86 = arith.mulf %81, %85 : vector<8x8x128xf32>
    %87 = arith.addf %59, %86 : vector<8x8x128xf32>
    %88 = vector.extract_strided_slice %52 {offsets = [5, 0, 0], sizes = [8, 8, 128], strides = [1, 1, 1]} : vector<14x8x128xf32> to vector<8x8x128xf32>
    %89 = vector.extract_strided_slice %5 {offsets = [36, 0], sizes = [1, 128], strides = [1, 1]} : vector<49x128xf32> to vector<1x128xf32>
    %90 = vector.shape_cast %89 : vector<1x128xf32> to vector<128xf32>
    %91 = vector.shape_cast %90 : vector<128xf32> to vector<1x1x128xf32>
    %92 = vector.broadcast %91 : vector<1x1x128xf32> to vector<8x8x128xf32>
    %93 = arith.mulf %88, %92 : vector<8x8x128xf32>
    %94 = arith.addf %66, %93 : vector<8x8x128xf32>
    %95 = vector.extract_strided_slice %52 {offsets = [6, 0, 0], sizes = [8, 8, 128], strides = [1, 1, 1]} : vector<14x8x128xf32> to vector<8x8x128xf32>
    %96 = vector.extract_strided_slice %5 {offsets = [43, 0], sizes = [1, 128], strides = [1, 1]} : vector<49x128xf32> to vector<1x128xf32>
    %97 = vector.shape_cast %96 : vector<1x128xf32> to vector<128xf32>
    %98 = vector.shape_cast %97 : vector<128xf32> to vector<1x1x128xf32>
    %99 = vector.broadcast %98 : vector<1x1x128xf32> to vector<8x8x128xf32>
    %100 = arith.mulf %95, %99 : vector<8x8x128xf32>
    %101 = arith.addf %73, %100 : vector<8x8x128xf32>
    %c0_15 = arith.constant 0 : index
    %c2 = arith.constant 2 : index
    %c0_16 = arith.constant 0 : index
    %102 = vector.load %arg6[%c0_15, %c2, %c0_16] : memref<14x14x128xf32, #tpu.memory_space<vmem>>, vector<14x8x128xf32>
    %103 = vector.extract_strided_slice %102 {offsets = [0, 0, 0], sizes = [8, 8, 128], strides = [1, 1, 1]} : vector<14x8x128xf32> to vector<8x8x128xf32>
    %104 = vector.extract_strided_slice %5 {offsets = [2, 0], sizes = [1, 128], strides = [1, 1]} : vector<49x128xf32> to vector<1x128xf32>
    %105 = vector.shape_cast %104 : vector<1x128xf32> to vector<128xf32>
    %106 = vector.shape_cast %105 : vector<128xf32> to vector<1x1x128xf32>
    %107 = vector.broadcast %106 : vector<1x1x128xf32> to vector<8x8x128xf32>
    %108 = arith.mulf %103, %107 : vector<8x8x128xf32>
    %109 = arith.addf %80, %108 : vector<8x8x128xf32>
    %110 = vector.extract_strided_slice %102 {offsets = [1, 0, 0], sizes = [8, 8, 128], strides = [1, 1, 1]} : vector<14x8x128xf32> to vector<8x8x128xf32>
    %111 = vector.extract_strided_slice %5 {offsets = [9, 0], sizes = [1, 128], strides = [1, 1]} : vector<49x128xf32> to vector<1x128xf32>
    %112 = vector.shape_cast %111 : vector<1x128xf32> to vector<128xf32>
    %113 = vector.shape_cast %112 : vector<128xf32> to vector<1x1x128xf32>
    %114 = vector.broadcast %113 : vector<1x1x128xf32> to vector<8x8x128xf32>
    %115 = arith.mulf %110, %114 : vector<8x8x128xf32>
    %116 = arith.addf %87, %115 : vector<8x8x128xf32>
    %117 = vector.extract_strided_slice %102 {offsets = [2, 0, 0], sizes = [8, 8, 128], strides = [1, 1, 1]} : vector<14x8x128xf32> to vector<8x8x128xf32>
    %118 = vector.extract_strided_slice %5 {offsets = [16, 0], sizes = [1, 128], strides = [1, 1]} : vector<49x128xf32> to vector<1x128xf32>
    %119 = vector.shape_cast %118 : vector<1x128xf32> to vector<128xf32>
    %120 = vector.shape_cast %119 : vector<128xf32> to vector<1x1x128xf32>
    %121 = vector.broadcast %120 : vector<1x1x128xf32> to vector<8x8x128xf32>
    %122 = arith.mulf %117, %121 : vector<8x8x128xf32>
    %123 = arith.addf %94, %122 : vector<8x8x128xf32>
    %124 = vector.extract_strided_slice %102 {offsets = [3, 0, 0], sizes = [8, 8, 128], strides = [1, 1, 1]} : vector<14x8x128xf32> to vector<8x8x128xf32>
    %125 = vector.extract_strided_slice %5 {offsets = [23, 0], sizes = [1, 128], strides = [1, 1]} : vector<49x128xf32> to vector<1x128xf32>
    %126 = vector.shape_cast %125 : vector<1x128xf32> to vector<128xf32>
    %127 = vector.shape_cast %126 : vector<128xf32> to vector<1x1x128xf32>
    %128 = vector.broadcast %127 : vector<1x1x128xf32> to vector<8x8x128xf32>
    %129 = arith.mulf %124, %128 : vector<8x8x128xf32>
    %130 = arith.addf %101, %129 : vector<8x8x128xf32>
    %131 = vector.extract_strided_slice %102 {offsets = [4, 0, 0], sizes = [8, 8, 128], strides = [1, 1, 1]} : vector<14x8x128xf32> to vector<8x8x128xf32>
    %132 = vector.extract_strided_slice %5 {offsets = [30, 0], sizes = [1, 128], strides = [1, 1]} : vector<49x128xf32> to vector<1x128xf32>
    %133 = vector.shape_cast %132 : vector<1x128xf32> to vector<128xf32>
    %134 = vector.shape_cast %133 : vector<128xf32> to vector<1x1x128xf32>
    %135 = vector.broadcast %134 : vector<1x1x128xf32> to vector<8x8x128xf32>
    %136 = arith.mulf %131, %135 : vector<8x8x128xf32>
    %137 = arith.addf %109, %136 : vector<8x8x128xf32>
    %138 = vector.extract_strided_slice %102 {offsets = [5, 0, 0], sizes = [8, 8, 128], strides = [1, 1, 1]} : vector<14x8x128xf32> to vector<8x8x128xf32>
    %139 = vector.extract_strided_slice %5 {offsets = [37, 0], sizes = [1, 128], strides = [1, 1]} : vector<49x128xf32> to vector<1x128xf32>
    %140 = vector.shape_cast %139 : vector<1x128xf32> to vector<128xf32>
    %141 = vector.shape_cast %140 : vector<128xf32> to vector<1x1x128xf32>
    %142 = vector.broadcast %141 : vector<1x1x128xf32> to vector<8x8x128xf32>
    %143 = arith.mulf %138, %142 : vector<8x8x128xf32>
    %144 = arith.addf %116, %143 : vector<8x8x128xf32>
    %145 = vector.extract_strided_slice %102 {offsets = [6, 0, 0], sizes = [8, 8, 128], strides = [1, 1, 1]} : vector<14x8x128xf32> to vector<8x8x128xf32>
    %146 = vector.extract_strided_slice %5 {offsets = [44, 0], sizes = [1, 128], strides = [1, 1]} : vector<49x128xf32> to vector<1x128xf32>
    %147 = vector.shape_cast %146 : vector<1x128xf32> to vector<128xf32>
    %148 = vector.shape_cast %147 : vector<128xf32> to vector<1x1x128xf32>
    %149 = vector.broadcast %148 : vector<1x1x128xf32> to vector<8x8x128xf32>
    %150 = arith.mulf %145, %149 : vector<8x8x128xf32>
    %151 = arith.addf %123, %150 : vector<8x8x128xf32>
    %c0_17 = arith.constant 0 : index
    %c3_18 = arith.constant 3 : index
    %c0_19 = arith.constant 0 : index
    %152 = vector.load %arg6[%c0_17, %c3_18, %c0_19] : memref<14x14x128xf32, #tpu.memory_space<vmem>>, vector<14x8x128xf32>
    %153 = vector.extract_strided_slice %152 {offsets = [0, 0, 0], sizes = [8, 8, 128], strides = [1, 1, 1]} : vector<14x8x128xf32> to vector<8x8x128xf32>
    %154 = vector.extract_strided_slice %5 {offsets = [3, 0], sizes = [1, 128], strides = [1, 1]} : vector<49x128xf32> to vector<1x128xf32>
    %155 = vector.shape_cast %154 : vector<1x128xf32> to vector<128xf32>
    %156 = vector.shape_cast %155 : vector<128xf32> to vector<1x1x128xf32>
    %157 = vector.broadcast %156 : vector<1x1x128xf32> to vector<8x8x128xf32>
    %158 = arith.mulf %153, %157 : vector<8x8x128xf32>
    %159 = arith.addf %130, %158 : vector<8x8x128xf32>
    %160 = vector.extract_strided_slice %152 {offsets = [1, 0, 0], sizes = [8, 8, 128], strides = [1, 1, 1]} : vector<14x8x128xf32> to vector<8x8x128xf32>
    %161 = vector.extract_strided_slice %5 {offsets = [10, 0], sizes = [1, 128], strides = [1, 1]} : vector<49x128xf32> to vector<1x128xf32>
    %162 = vector.shape_cast %161 : vector<1x128xf32> to vector<128xf32>
    %163 = vector.shape_cast %162 : vector<128xf32> to vector<1x1x128xf32>
    %164 = vector.broadcast %163 : vector<1x1x128xf32> to vector<8x8x128xf32>
    %165 = arith.mulf %160, %164 : vector<8x8x128xf32>
    %166 = arith.addf %137, %165 : vector<8x8x128xf32>
    %167 = vector.extract_strided_slice %152 {offsets = [2, 0, 0], sizes = [8, 8, 128], strides = [1, 1, 1]} : vector<14x8x128xf32> to vector<8x8x128xf32>
    %168 = vector.extract_strided_slice %5 {offsets = [17, 0], sizes = [1, 128], strides = [1, 1]} : vector<49x128xf32> to vector<1x128xf32>
    %169 = vector.shape_cast %168 : vector<1x128xf32> to vector<128xf32>
    %170 = vector.shape_cast %169 : vector<128xf32> to vector<1x1x128xf32>
    %171 = vector.broadcast %170 : vector<1x1x128xf32> to vector<8x8x128xf32>
    %172 = arith.mulf %167, %171 : vector<8x8x128xf32>
    %173 = arith.addf %144, %172 : vector<8x8x128xf32>
    %174 = vector.extract_strided_slice %152 {offsets = [3, 0, 0], sizes = [8, 8, 128], strides = [1, 1, 1]} : vector<14x8x128xf32> to vector<8x8x128xf32>
    %175 = vector.extract_strided_slice %5 {offsets = [24, 0], sizes = [1, 128], strides = [1, 1]} : vector<49x128xf32> to vector<1x128xf32>
    %176 = vector.shape_cast %175 : vector<1x128xf32> to vector<128xf32>
    %177 = vector.shape_cast %176 : vector<128xf32> to vector<1x1x128xf32>
    %178 = vector.broadcast %177 : vector<1x1x128xf32> to vector<8x8x128xf32>
    %179 = arith.mulf %174, %178 : vector<8x8x128xf32>
    %180 = arith.addf %151, %179 : vector<8x8x128xf32>
    %181 = vector.extract_strided_slice %152 {offsets = [4, 0, 0], sizes = [8, 8, 128], strides = [1, 1, 1]} : vector<14x8x128xf32> to vector<8x8x128xf32>
    %182 = vector.extract_strided_slice %5 {offsets = [31, 0], sizes = [1, 128], strides = [1, 1]} : vector<49x128xf32> to vector<1x128xf32>
    %183 = vector.shape_cast %182 : vector<1x128xf32> to vector<128xf32>
    %184 = vector.shape_cast %183 : vector<128xf32> to vector<1x1x128xf32>
    %185 = vector.broadcast %184 : vector<1x1x128xf32> to vector<8x8x128xf32>
    %186 = arith.mulf %181, %185 : vector<8x8x128xf32>
    %187 = arith.addf %159, %186 : vector<8x8x128xf32>
    %188 = vector.extract_strided_slice %152 {offsets = [5, 0, 0], sizes = [8, 8, 128], strides = [1, 1, 1]} : vector<14x8x128xf32> to vector<8x8x128xf32>
    %189 = vector.extract_strided_slice %5 {offsets = [38, 0], sizes = [1, 128], strides = [1, 1]} : vector<49x128xf32> to vector<1x128xf32>
    %190 = vector.shape_cast %189 : vector<1x128xf32> to vector<128xf32>
    %191 = vector.shape_cast %190 : vector<128xf32> to vector<1x1x128xf32>
    %192 = vector.broadcast %191 : vector<1x1x128xf32> to vector<8x8x128xf32>
    %193 = arith.mulf %188, %192 : vector<8x8x128xf32>
    %194 = arith.addf %166, %193 : vector<8x8x128xf32>
    %195 = vector.extract_strided_slice %152 {offsets = [6, 0, 0], sizes = [8, 8, 128], strides = [1, 1, 1]} : vector<14x8x128xf32> to vector<8x8x128xf32>
    %196 = vector.extract_strided_slice %5 {offsets = [45, 0], sizes = [1, 128], strides = [1, 1]} : vector<49x128xf32> to vector<1x128xf32>
    %197 = vector.shape_cast %196 : vector<1x128xf32> to vector<128xf32>
    %198 = vector.shape_cast %197 : vector<128xf32> to vector<1x1x128xf32>
    %199 = vector.broadcast %198 : vector<1x1x128xf32> to vector<8x8x128xf32>
    %200 = arith.mulf %195, %199 : vector<8x8x128xf32>
    %201 = arith.addf %173, %200 : vector<8x8x128xf32>
    %c0_20 = arith.constant 0 : index
    %c4 = arith.constant 4 : index
    %c0_21 = arith.constant 0 : index
    %202 = vector.load %arg6[%c0_20, %c4, %c0_21] : memref<14x14x128xf32, #tpu.memory_space<vmem>>, vector<14x8x128xf32>
    %203 = vector.extract_strided_slice %202 {offsets = [0, 0, 0], sizes = [8, 8, 128], strides = [1, 1, 1]} : vector<14x8x128xf32> to vector<8x8x128xf32>
    %204 = vector.extract_strided_slice %5 {offsets = [4, 0], sizes = [1, 128], strides = [1, 1]} : vector<49x128xf32> to vector<1x128xf32>
    %205 = vector.shape_cast %204 : vector<1x128xf32> to vector<128xf32>
    %206 = vector.shape_cast %205 : vector<128xf32> to vector<1x1x128xf32>
    %207 = vector.broadcast %206 : vector<1x1x128xf32> to vector<8x8x128xf32>
    %208 = arith.mulf %203, %207 : vector<8x8x128xf32>
    %209 = arith.addf %180, %208 : vector<8x8x128xf32>
    %210 = vector.extract_strided_slice %202 {offsets = [1, 0, 0], sizes = [8, 8, 128], strides = [1, 1, 1]} : vector<14x8x128xf32> to vector<8x8x128xf32>
    %211 = vector.extract_strided_slice %5 {offsets = [11, 0], sizes = [1, 128], strides = [1, 1]} : vector<49x128xf32> to vector<1x128xf32>
    %212 = vector.shape_cast %211 : vector<1x128xf32> to vector<128xf32>
    %213 = vector.shape_cast %212 : vector<128xf32> to vector<1x1x128xf32>
    %214 = vector.broadcast %213 : vector<1x1x128xf32> to vector<8x8x128xf32>
    %215 = arith.mulf %210, %214 : vector<8x8x128xf32>
    %216 = arith.addf %187, %215 : vector<8x8x128xf32>
    %217 = vector.extract_strided_slice %202 {offsets = [2, 0, 0], sizes = [8, 8, 128], strides = [1, 1, 1]} : vector<14x8x128xf32> to vector<8x8x128xf32>
    %218 = vector.extract_strided_slice %5 {offsets = [18, 0], sizes = [1, 128], strides = [1, 1]} : vector<49x128xf32> to vector<1x128xf32>
    %219 = vector.shape_cast %218 : vector<1x128xf32> to vector<128xf32>
    %220 = vector.shape_cast %219 : vector<128xf32> to vector<1x1x128xf32>
    %221 = vector.broadcast %220 : vector<1x1x128xf32> to vector<8x8x128xf32>
    %222 = arith.mulf %217, %221 : vector<8x8x128xf32>
    %223 = arith.addf %194, %222 : vector<8x8x128xf32>
    %224 = vector.extract_strided_slice %202 {offsets = [3, 0, 0], sizes = [8, 8, 128], strides = [1, 1, 1]} : vector<14x8x128xf32> to vector<8x8x128xf32>
    %225 = vector.extract_strided_slice %5 {offsets = [25, 0], sizes = [1, 128], strides = [1, 1]} : vector<49x128xf32> to vector<1x128xf32>
    %226 = vector.shape_cast %225 : vector<1x128xf32> to vector<128xf32>
    %227 = vector.shape_cast %226 : vector<128xf32> to vector<1x1x128xf32>
    %228 = vector.broadcast %227 : vector<1x1x128xf32> to vector<8x8x128xf32>
    %229 = arith.mulf %224, %228 : vector<8x8x128xf32>
    %230 = arith.addf %201, %229 : vector<8x8x128xf32>
    %231 = vector.extract_strided_slice %202 {offsets = [4, 0, 0], sizes = [8, 8, 128], strides = [1, 1, 1]} : vector<14x8x128xf32> to vector<8x8x128xf32>
    %232 = vector.extract_strided_slice %5 {offsets = [32, 0], sizes = [1, 128], strides = [1, 1]} : vector<49x128xf32> to vector<1x128xf32>
    %233 = vector.shape_cast %232 : vector<1x128xf32> to vector<128xf32>
    %234 = vector.shape_cast %233 : vector<128xf32> to vector<1x1x128xf32>
    %235 = vector.broadcast %234 : vector<1x1x128xf32> to vector<8x8x128xf32>
    %236 = arith.mulf %231, %235 : vector<8x8x128xf32>
    %237 = arith.addf %209, %236 : vector<8x8x128xf32>
    %238 = vector.extract_strided_slice %202 {offsets = [5, 0, 0], sizes = [8, 8, 128], strides = [1, 1, 1]} : vector<14x8x128xf32> to vector<8x8x128xf32>
    %239 = vector.extract_strided_slice %5 {offsets = [39, 0], sizes = [1, 128], strides = [1, 1]} : vector<49x128xf32> to vector<1x128xf32>
    %240 = vector.shape_cast %239 : vector<1x128xf32> to vector<128xf32>
    %241 = vector.shape_cast %240 : vector<128xf32> to vector<1x1x128xf32>
    %242 = vector.broadcast %241 : vector<1x1x128xf32> to vector<8x8x128xf32>
    %243 = arith.mulf %238, %242 : vector<8x8x128xf32>
    %244 = arith.addf %216, %243 : vector<8x8x128xf32>
    %245 = vector.extract_strided_slice %202 {offsets = [6, 0, 0], sizes = [8, 8, 128], strides = [1, 1, 1]} : vector<14x8x128xf32> to vector<8x8x128xf32>
    %246 = vector.extract_strided_slice %5 {offsets = [46, 0], sizes = [1, 128], strides = [1, 1]} : vector<49x128xf32> to vector<1x128xf32>
    %247 = vector.shape_cast %246 : vector<1x128xf32> to vector<128xf32>
    %248 = vector.shape_cast %247 : vector<128xf32> to vector<1x1x128xf32>
    %249 = vector.broadcast %248 : vector<1x1x128xf32> to vector<8x8x128xf32>
    %250 = arith.mulf %245, %249 : vector<8x8x128xf32>
    %251 = arith.addf %223, %250 : vector<8x8x128xf32>
    %c0_22 = arith.constant 0 : index
    %c5 = arith.constant 5 : index
    %c0_23 = arith.constant 0 : index
    %252 = vector.load %arg6[%c0_22, %c5, %c0_23] : memref<14x14x128xf32, #tpu.memory_space<vmem>>, vector<14x8x128xf32>
    %253 = vector.extract_strided_slice %252 {offsets = [0, 0, 0], sizes = [8, 8, 128], strides = [1, 1, 1]} : vector<14x8x128xf32> to vector<8x8x128xf32>
    %254 = vector.extract_strided_slice %5 {offsets = [5, 0], sizes = [1, 128], strides = [1, 1]} : vector<49x128xf32> to vector<1x128xf32>
    %255 = vector.shape_cast %254 : vector<1x128xf32> to vector<128xf32>
    %256 = vector.shape_cast %255 : vector<128xf32> to vector<1x1x128xf32>
    %257 = vector.broadcast %256 : vector<1x1x128xf32> to vector<8x8x128xf32>
    %258 = arith.mulf %253, %257 : vector<8x8x128xf32>
    %259 = arith.addf %230, %258 : vector<8x8x128xf32>
    %260 = vector.extract_strided_slice %252 {offsets = [1, 0, 0], sizes = [8, 8, 128], strides = [1, 1, 1]} : vector<14x8x128xf32> to vector<8x8x128xf32>
    %261 = vector.extract_strided_slice %5 {offsets = [12, 0], sizes = [1, 128], strides = [1, 1]} : vector<49x128xf32> to vector<1x128xf32>
    %262 = vector.shape_cast %261 : vector<1x128xf32> to vector<128xf32>
    %263 = vector.shape_cast %262 : vector<128xf32> to vector<1x1x128xf32>
    %264 = vector.broadcast %263 : vector<1x1x128xf32> to vector<8x8x128xf32>
    %265 = arith.mulf %260, %264 : vector<8x8x128xf32>
    %266 = arith.addf %237, %265 : vector<8x8x128xf32>
    %267 = vector.extract_strided_slice %252 {offsets = [2, 0, 0], sizes = [8, 8, 128], strides = [1, 1, 1]} : vector<14x8x128xf32> to vector<8x8x128xf32>
    %268 = vector.extract_strided_slice %5 {offsets = [19, 0], sizes = [1, 128], strides = [1, 1]} : vector<49x128xf32> to vector<1x128xf32>
    %269 = vector.shape_cast %268 : vector<1x128xf32> to vector<128xf32>
    %270 = vector.shape_cast %269 : vector<128xf32> to vector<1x1x128xf32>
    %271 = vector.broadcast %270 : vector<1x1x128xf32> to vector<8x8x128xf32>
    %272 = arith.mulf %267, %271 : vector<8x8x128xf32>
    %273 = arith.addf %244, %272 : vector<8x8x128xf32>
    %274 = vector.extract_strided_slice %252 {offsets = [3, 0, 0], sizes = [8, 8, 128], strides = [1, 1, 1]} : vector<14x8x128xf32> to vector<8x8x128xf32>
    %275 = vector.extract_strided_slice %5 {offsets = [26, 0], sizes = [1, 128], strides = [1, 1]} : vector<49x128xf32> to vector<1x128xf32>
    %276 = vector.shape_cast %275 : vector<1x128xf32> to vector<128xf32>
    %277 = vector.shape_cast %276 : vector<128xf32> to vector<1x1x128xf32>
    %278 = vector.broadcast %277 : vector<1x1x128xf32> to vector<8x8x128xf32>
    %279 = arith.mulf %274, %278 : vector<8x8x128xf32>
    %280 = arith.addf %251, %279 : vector<8x8x128xf32>
    %281 = vector.extract_strided_slice %252 {offsets = [4, 0, 0], sizes = [8, 8, 128], strides = [1, 1, 1]} : vector<14x8x128xf32> to vector<8x8x128xf32>
    %282 = vector.extract_strided_slice %5 {offsets = [33, 0], sizes = [1, 128], strides = [1, 1]} : vector<49x128xf32> to vector<1x128xf32>
    %283 = vector.shape_cast %282 : vector<1x128xf32> to vector<128xf32>
    %284 = vector.shape_cast %283 : vector<128xf32> to vector<1x1x128xf32>
    %285 = vector.broadcast %284 : vector<1x1x128xf32> to vector<8x8x128xf32>
    %286 = arith.mulf %281, %285 : vector<8x8x128xf32>
    %287 = arith.addf %259, %286 : vector<8x8x128xf32>
    %288 = vector.extract_strided_slice %252 {offsets = [5, 0, 0], sizes = [8, 8, 128], strides = [1, 1, 1]} : vector<14x8x128xf32> to vector<8x8x128xf32>
    %289 = vector.extract_strided_slice %5 {offsets = [40, 0], sizes = [1, 128], strides = [1, 1]} : vector<49x128xf32> to vector<1x128xf32>
    %290 = vector.shape_cast %289 : vector<1x128xf32> to vector<128xf32>
    %291 = vector.shape_cast %290 : vector<128xf32> to vector<1x1x128xf32>
    %292 = vector.broadcast %291 : vector<1x1x128xf32> to vector<8x8x128xf32>
    %293 = arith.mulf %288, %292 : vector<8x8x128xf32>
    %294 = arith.addf %266, %293 : vector<8x8x128xf32>
    %295 = vector.extract_strided_slice %252 {offsets = [6, 0, 0], sizes = [8, 8, 128], strides = [1, 1, 1]} : vector<14x8x128xf32> to vector<8x8x128xf32>
    %296 = vector.extract_strided_slice %5 {offsets = [47, 0], sizes = [1, 128], strides = [1, 1]} : vector<49x128xf32> to vector<1x128xf32>
    %297 = vector.shape_cast %296 : vector<1x128xf32> to vector<128xf32>
    %298 = vector.shape_cast %297 : vector<128xf32> to vector<1x1x128xf32>
    %299 = vector.broadcast %298 : vector<1x1x128xf32> to vector<8x8x128xf32>
    %300 = arith.mulf %295, %299 : vector<8x8x128xf32>
    %301 = arith.addf %273, %300 : vector<8x8x128xf32>
    %c0_24 = arith.constant 0 : index
    %c6 = arith.constant 6 : index
    %c0_25 = arith.constant 0 : index
    %302 = vector.load %arg6[%c0_24, %c6, %c0_25] : memref<14x14x128xf32, #tpu.memory_space<vmem>>, vector<14x8x128xf32>
    %303 = vector.extract_strided_slice %302 {offsets = [0, 0, 0], sizes = [8, 8, 128], strides = [1, 1, 1]} : vector<14x8x128xf32> to vector<8x8x128xf32>
    %304 = vector.extract_strided_slice %5 {offsets = [6, 0], sizes = [1, 128], strides = [1, 1]} : vector<49x128xf32> to vector<1x128xf32>
    %305 = vector.shape_cast %304 : vector<1x128xf32> to vector<128xf32>
    %306 = vector.shape_cast %305 : vector<128xf32> to vector<1x1x128xf32>
    %307 = vector.broadcast %306 : vector<1x1x128xf32> to vector<8x8x128xf32>
    %308 = arith.mulf %303, %307 : vector<8x8x128xf32>
    %309 = arith.addf %280, %308 : vector<8x8x128xf32>
    %310 = vector.extract_strided_slice %302 {offsets = [1, 0, 0], sizes = [8, 8, 128], strides = [1, 1, 1]} : vector<14x8x128xf32> to vector<8x8x128xf32>
    %311 = vector.extract_strided_slice %5 {offsets = [13, 0], sizes = [1, 128], strides = [1, 1]} : vector<49x128xf32> to vector<1x128xf32>
    %312 = vector.shape_cast %311 : vector<1x128xf32> to vector<128xf32>
    %313 = vector.shape_cast %312 : vector<128xf32> to vector<1x1x128xf32>
    %314 = vector.broadcast %313 : vector<1x1x128xf32> to vector<8x8x128xf32>
    %315 = arith.mulf %310, %314 : vector<8x8x128xf32>
    %316 = arith.addf %287, %315 : vector<8x8x128xf32>
    %317 = vector.extract_strided_slice %302 {offsets = [2, 0, 0], sizes = [8, 8, 128], strides = [1, 1, 1]} : vector<14x8x128xf32> to vector<8x8x128xf32>
    %318 = vector.extract_strided_slice %5 {offsets = [20, 0], sizes = [1, 128], strides = [1, 1]} : vector<49x128xf32> to vector<1x128xf32>
    %319 = vector.shape_cast %318 : vector<1x128xf32> to vector<128xf32>
    %320 = vector.shape_cast %319 : vector<128xf32> to vector<1x1x128xf32>
    %321 = vector.broadcast %320 : vector<1x1x128xf32> to vector<8x8x128xf32>
    %322 = arith.mulf %317, %321 : vector<8x8x128xf32>
    %323 = arith.addf %294, %322 : vector<8x8x128xf32>
    %324 = vector.extract_strided_slice %302 {offsets = [3, 0, 0], sizes = [8, 8, 128], strides = [1, 1, 1]} : vector<14x8x128xf32> to vector<8x8x128xf32>
    %325 = vector.extract_strided_slice %5 {offsets = [27, 0], sizes = [1, 128], strides = [1, 1]} : vector<49x128xf32> to vector<1x128xf32>
    %326 = vector.shape_cast %325 : vector<1x128xf32> to vector<128xf32>
    %327 = vector.shape_cast %326 : vector<128xf32> to vector<1x1x128xf32>
    %328 = vector.broadcast %327 : vector<1x1x128xf32> to vector<8x8x128xf32>
    %329 = arith.mulf %324, %328 : vector<8x8x128xf32>
    %330 = arith.addf %301, %329 : vector<8x8x128xf32>
    %331 = vector.extract_strided_slice %302 {offsets = [4, 0, 0], sizes = [8, 8, 128], strides = [1, 1, 1]} : vector<14x8x128xf32> to vector<8x8x128xf32>
    %332 = vector.extract_strided_slice %5 {offsets = [34, 0], sizes = [1, 128], strides = [1, 1]} : vector<49x128xf32> to vector<1x128xf32>
    %333 = vector.shape_cast %332 : vector<1x128xf32> to vector<128xf32>
    %334 = vector.shape_cast %333 : vector<128xf32> to vector<1x1x128xf32>
    %335 = vector.broadcast %334 : vector<1x1x128xf32> to vector<8x8x128xf32>
    %336 = arith.mulf %331, %335 : vector<8x8x128xf32>
    %337 = arith.addf %309, %336 : vector<8x8x128xf32>
    %338 = vector.extract_strided_slice %302 {offsets = [5, 0, 0], sizes = [8, 8, 128], strides = [1, 1, 1]} : vector<14x8x128xf32> to vector<8x8x128xf32>
    %339 = vector.extract_strided_slice %5 {offsets = [41, 0], sizes = [1, 128], strides = [1, 1]} : vector<49x128xf32> to vector<1x128xf32>
    %340 = vector.shape_cast %339 : vector<1x128xf32> to vector<128xf32>
    %341 = vector.shape_cast %340 : vector<128xf32> to vector<1x1x128xf32>
    %342 = vector.broadcast %341 : vector<1x1x128xf32> to vector<8x8x128xf32>
    %343 = arith.mulf %338, %342 : vector<8x8x128xf32>
    %344 = arith.addf %316, %343 : vector<8x8x128xf32>
    %345 = vector.extract_strided_slice %302 {offsets = [6, 0, 0], sizes = [8, 8, 128], strides = [1, 1, 1]} : vector<14x8x128xf32> to vector<8x8x128xf32>
    %346 = vector.extract_strided_slice %5 {offsets = [48, 0], sizes = [1, 128], strides = [1, 1]} : vector<49x128xf32> to vector<1x128xf32>
    %347 = vector.shape_cast %346 : vector<1x128xf32> to vector<128xf32>
    %348 = vector.shape_cast %347 : vector<128xf32> to vector<1x1x128xf32>
    %349 = vector.broadcast %348 : vector<1x1x128xf32> to vector<8x8x128xf32>
    %350 = arith.mulf %345, %349 : vector<8x8x128xf32>
    %351 = arith.addf %323, %350 : vector<8x8x128xf32>
    %352 = arith.addf %351, %330 : vector<8x8x128xf32>
    %353 = arith.addf %337, %344 : vector<8x8x128xf32>
    %354 = arith.addf %352, %353 : vector<8x8x128xf32>
    %c0_26 = arith.constant 0 : index
    %c0_27 = arith.constant 0 : index
    %c0_28 = arith.constant 0 : index
    %355 = vector.load %arg4[%c0_26, %c0_27, %c0_28] : memref<1x1x128xf32, #tpu.memory_space<vmem>>, vector<1x1x128xf32>
    %356 = vector.broadcast %355 : vector<1x1x128xf32> to vector<8x8x128xf32>
    %357 = arith.addf %354, %356 : vector<8x8x128xf32>
    %c0_29 = arith.constant 0 : index
    %c0_30 = arith.constant 0 : index
    %c0_31 = arith.constant 0 : index
    %c0_32 = arith.constant 0 : index
    %358 = vector.load %arg5[%c0_29, %c0_30, %c0_31, %c0_32] : memref<1x8x8x128xf32, #tpu.memory_space<vmem>>, vector<1x8x8x128xf32>
    %359 = vector.shape_cast %358 : vector<1x8x8x128xf32> to vector<8x8x128xf32>
    %360 = vector.shape_cast %357 : vector<8x8x128xf32> to vector<1x8x8x128xf32>
    tpu.vector_store %arg5[%c0_29, %c0_30, %c0_31, %c0_32], %360 {strides = array<i32>} : memref<1x8x8x128xf32, #tpu.memory_space<vmem>>, vector<1x8x8x128xf32>,
    return
  }
  func.func @transform_0(%arg0: i32, %arg1: i32) -> (i32, i32, i32, i32) {
    %c0_i32 = arith.constant 0 : i32
    %c0_i32_0 = arith.constant 0 : i32
    %c0_i32_1 = arith.constant 0 : i32
    return %arg0, %c0_i32, %c0_i32_0, %arg1 : i32, i32, i32, i32
  }
  func.func @transform_1(%arg0: i32, %arg1: i32) -> (i32, i32) {
    %c0_i32 = arith.constant 0 : i32
    %c0_i32_0 = arith.constant 0 : i32
    return %c0_i32, %arg1 : i32, i32
  }
  func.func @transform_2(%arg0: i32, %arg1: i32) -> (i32, i32, i32) {
    %c0_i32 = arith.constant 0 : i32
    %c0_i32_0 = arith.constant 0 : i32
    %c0_i32_1 = arith.constant 0 : i32
    return %c0_i32, %c0_i32_0, %arg1 : i32, i32, i32
  }
  func.func @transform_3(%arg0: i32, %arg1: i32) -> (i32, i32, i32, i32) {
    %c0_i32 = arith.constant 0 : i32
    %c0_i32_0 = arith.constant 0 : i32
    %c0_i32_1 = arith.constant 0 : i32
    return %arg0, %c0_i32, %c0_i32_0, %arg1 : i32, i32, i32, i32
  }
}

</mosaic_0001>

<bundles_post_ra>
// kernel: ppeg_forward.1
= control target key start
LH: loop header
LB: loop body
LE: loop exit
PB: predicated region body
PF: predicated region fallthrough
CT: control target
= control target key end

     0   :  { %s1609_s12 = smov 0   ;;  %s1611_s13 = smov 0   ;;  %s2899_s0 = inlined_call_operand.vmem [shape: f32[2,8,8,128], index: 0, kind: input, shape index: {}]   ;;  %s2900_s1 = inlined_call_operand.vmem [shape: f32[49,128], index: 1, kind: input, shape index: {}]   ;;  %s2901_s2 = inlined_call_operand.vmem [shape: f32[1,1,128], index: 2, kind: input, shape index: {}]   ;;  %s2902_s3 = inlined_call_operand.vmem [shape: f32[2,8,8,128], index: 3, kind: output, shape index: {}]  }
   0x1   :  { %s1613_s14 = smov 0  }
   0x2 LB: > { %s25_s15 = sadd.s32 1, %s1582_s13  ;;  %p1495_p0 = scmp.ge.s32.totalorder %s1586_s14, 1  ;;  %s1586_s14 = sphi %s1613_s14, %s13_s14   ;;  %s1582_s13 = sphi %s1611_s13, %s3644_s13   ;;  %s1578_s12 = sphi %s1609_s12, %s3643_s12  }
   0x3   : > { %p27_p1 = scmp.ge.s32.totalorder %s25_s15, 2  ;;  %p173_p2 = scmp.lt.s32.totalorder %s1586_s14, 3 }
   0x5   : > { %s3646_s15 = smov (%p27_p1, %s25_s15), 0  ;;  %p174_p3 = pnand %p1495_p0, %p173_p2 }
   0x7   : > { %177 = sbr.rel (%p174_p3) target bundleno = 267 (0x10b), region = 32 }
   0xe   : > { %p210_p4 = scmp.lt.s32.totalorder %s1578_s12, 1  ;;  %v299_v0 = vlaneseq  ;;  %v1588_v1 = vmov 0.0   ;;  %v1638_v2 = vld [vmem:[%s2900_s1] sm:$0xff]  ;;  %v1643_v3 = vld [vmem:[%s2900_s1 + $0x8] sm:$0xff]  ;;  %v1648_v5 = vld [vmem:[%s2900_s1 + $0x10] sm:$0xff] }
   0xf   : > { %239 = vst [vmem:[#allocation2 + $0x30] sm:$0xff] %v1588_v1  ;;  %233 = vst [vmem:[#allocation2] sm:$0xff] %v1588_v1  ;;  %v1653_v6 = vld [vmem:[%s2900_s1 + $0x18] sm:$0xff]  ;;  %v1658_v7 = vld [vmem:[%s2900_s1 + $0x20] sm:$0xff] }
  0x10   : > { %234 = vst [vmem:[#allocation2 + $0x8] sm:$0x3f] %v1588_v1  ;;  %235 = vst [vmem:[#allocation2 + $0x10] sm:$0xff] %v1588_v1  ;;  %s3648_s12 = smov (!%p210_p4, %s1578_s12), 1  ;;  %v300_v4 = vshrl.u32 %v299_v0, 7  ;;  %v1664_v8 = vld [vmem:[%s2900_s1 + $0x28] sm:$0xff] }
  0x11   : > { %236 = vst [vmem:[#allocation2 + $0x18] sm:$0x3f] %v1588_v1  ;;  %237 = vst [vmem:[#allocation2 + $0x20] sm:$0xff] %v1588_v1  ;;  %s1504_s26 = sshll.u32 %s3648_s12, 6 }
  0x12   : > { %238 = vst [vmem:[#allocation2 + $0x28] sm:$0x3f] %v1588_v1  ;;  %240 = vst [vmem:[#allocation2 + $0x38] sm:$0x3f] %v1588_v1  ;;  %v1666_v9 = vsub.s32 0, %v300_v4  ;;  %v1668_v10 = vsub.s32 7, %v300_v4  ;;  %s217_s4 = scalar_lea.vmem %s2899_s0, %s1504_s26  ;;  %s2119_s11 = scalar_lea.vmem %s2902_s3, %s1504_s26 }
  0x13   : > { %241 = vst [vmem:[#allocation2 + $0x40] sm:$0xff] %v1588_v1  ;;  %242 = vst [vmem:[#allocation2 + $0x48] sm:$0x3f] %v1588_v1  ;;  %v1670_v11 = vsub.s32 6, %v300_v4  ;;  %v1672_v12 = vsub.s32 5, %v300_v4  ;;  %v1679_v13 = vsub.s32 4, %v300_v4 }
  0x14   : > { %243 = vst [vmem:[#allocation2 + $0x50] sm:$0xff] %v1588_v1  ;;  %244 = vst [vmem:[#allocation2 + $0x58] sm:$0x3f] %v1588_v1  ;;  %v1681_v14 = vsub.s32 3, %v300_v4  ;;  %v1683_v15 = vsub.s32 2, %v300_v4  ;;  %v1685_v16 = vsub.s32 1, %v300_v4  ;;  %v1695_v20 = vrot.slane %v1638_v2, %v1666_v9 }
  0x15   : > { %245 = vst [vmem:[#allocation2 + $0x60] sm:$0xff] %v1588_v1  ;;  %246 = vst [vmem:[#allocation2 + $0x68] sm:$0x3f] %v1588_v1  ;;  %v1687_v17 = vld [vmem:[%s217_s4] sm:$0xff]  ;;  %v1689_v18 = vld [vmem:[%s217_s4 + $0x8] sm:$0xff]  ;;  %v1699_v21 = vrot.slane %v1638_v2, %v1668_v10  ;;  %v1703_v22 = vrot.slane %v1643_v3, %v1670_v11  ;;  %v1707_v23 = vrot.slane %v1648_v5, %v1672_v12 }
  0x16   : > { %247 = vst [vmem:[#allocation2 + $0x70] sm:$0xff] %v1588_v1  ;;  %248 = vst [vmem:[#allocation2 + $0x78] sm:$0x3f] %v1588_v1  ;;  %v1691_v19 = vld [vmem:[%s217_s4 + $0x10] sm:$0xff]  ;;  %v1712_v24 = vld [vmem:[%s217_s4 + $0x18] sm:$0xff]  ;;  %v1720_v27 = vrot.slane %v1653_v6, %v1679_v13  ;;  %v1724_v28 = vrot.slane %v1658_v7, %v1681_v14  ;;  %v1728_v29 = vrot.slane %v1664_v8, %v1683_v15  ;;  %v1740_v33 = vmul.f32 0.0, %v1695_v20 }
  0x17   : > { %249 = vst [vmem:[#allocation2 + $0x80] sm:$0xff] %v1588_v1  ;;  %250 = vst [vmem:[#allocation2 + $0x88] sm:$0x3f] %v1588_v1  ;;  %v1714_v25 = vld [vmem:[%s217_s4 + $0x20] sm:$0xff]  ;;  %v1716_v26 = vld [vmem:[%s217_s4 + $0x28] sm:$0xff]  ;;  %v1732_v30 = vrot.slane %v1638_v2, %v1685_v16  ;;  %v1743_v34 = vmul.f32 0.0, %v1699_v21  ;;  %v1748_v37 = vrot.slane %v1643_v3, %v1666_v9  ;;  %v1756_v40 = vrot.slane %v1643_v3, %v1668_v10 }
  0x18   : > { %251 = vst [vmem:[#allocation2 + $0x90] sm:$0xff] %v1588_v1  ;;  %252 = vst [vmem:[#allocation2 + $0x98] sm:$0x3f] %v1588_v1  ;;  %v1737_v31 = vld [vmem:[%s217_s4 + $0x30] sm:$0xff]  ;;  %v268_v32 = vld [vmem:[%s217_s4 + $0x38] sm:$0xff]  ;;  %v327_v35 = vmul.f32 0.0, %v1703_v22  ;;  %v1760_v41 = vrot.slane %v1648_v5, %v1670_v11  ;;  %v1764_v42 = vrot.slane %v1653_v6, %v1672_v12  ;;  %v1772_v46 = vrot.slane %v1658_v7, %v1679_v13 }
  0x19   : > { %253 = vst [vmem:[#allocation2 + $0xa0] sm:$0xff] %v1588_v1  ;;  %254 = vst [vmem:[#allocation2 + $0xa8] sm:$0x3f] %v1588_v1  ;;  %v407_v36 = vld [vmem:[#allocation2 + $0x1] sm:$0xff]  ;;  %v1751_v38 = vld [vmem:[#allocation2 + $0x11] sm:$0xff]  ;;  %v1776_v47 = vrot.slane %v1664_v8, %v1681_v14  ;;  %v1784_v50 = vrot.slane %v1638_v2, %v1683_v15  ;;  %v1790_v52 = vrot.slane %v1643_v3, %v1685_v16 }
  0x1a   : > { %255 = vst [vmem:[#allocation2 + $0xb0] sm:$0xff] %v1588_v1  ;;  %256 = vst [vmem:[#allocation2 + $0xb8] sm:$0x3f] %v1588_v1  ;;  %v425_v39 = vmul.f32 %v1732_v30, %v407_v36  ;;  %v561_v43 = vld [vmem:[#allocation2 + $0x2] sm:$0xff]  ;;  %v445_v45 = vmul.f32 %v1748_v37, %v1751_v38  ;;  %v1778_v48 = vld [vmem:[#allocation2 + $0x12] sm:$0xff]  ;;  %v1794_v53 = vrot.slane %v1648_v5, %v1666_v9 }
  0x1b   : > { %257 = vst [vmem:[#allocation2 + $0xc0] sm:$0xff] %v1588_v1  ;;  %258 = vst [vmem:[#allocation2 + $0xc8] sm:$0x3f] %v1588_v1  ;;  %v1766_v44 = vld [vmem:[#allocation2 + $0x21] sm:$0xff]  ;;  %v1798_v54 = vrot.slane %v1648_v5, %v1668_v10  ;;  %v1801_v55 = vmul.f32 %v1784_v50, %v561_v43  ;;  %v1805_v56 = vrot.slane %v1653_v6, %v1670_v11  ;;  %v1819_v62 = vld [vmem:[#allocation2 + $0x13] sm:$0xff] }
  0x1c   : > { %259 = vst [vmem:[#allocation2 + $0xd0] sm:$0xff] %v1588_v1  ;;  %260 = vst [vmem:[#allocation2 + $0xd8] sm:$0x3f] %v1588_v1  ;;  %v1780_v49 = vld [vmem:[#allocation2 + $0x22] sm:$0xff]  ;;  %v465_v51 = vmul.f32 %v1756_v40, %v1766_v44  ;;  %v1809_v57 = vrot.slane %v1658_v7, %v1672_v12  ;;  %v1813_v58 = vrot.slane %v1664_v8, %v1679_v13 }
  0x1d   : > { %3181 = vst [vmem:[#allocation3_spill] sm:$0xff] %v1687_v17  ;;  %3182 = vst [vmem:[#allocation4_spill] sm:$0xff] %v1689_v18  ;;  %v715_v59 = vld [vmem:[#allocation2 + $0x3] sm:$0xff]  ;;  %v599_v60 = vmul.f32 %v1790_v52, %v1778_v48  ;;  %v619_v61 = vmul.f32 %v1794_v53, %v1780_v49  ;;  %v1825_v0 = vrot.slane %v1638_v2, %v1681_v14 }
  0x1e   : > { %3183 = vst [vmem:[#allocation5_spill] sm:$0xff] %v1691_v19  ;;  %3184 = vst [vmem:[#allocation6_spill] sm:$0xff] %v1695_v20  ;;  %v1821_v63 = vld [vmem:[#allocation2 + $0x23] sm:$0xff]  ;;  %v1829_v1 = vrot.slane %v1643_v3, %v1683_v15  ;;  %v1839_v43 = vrot.slane %v1648_v5, %v1685_v16  ;;  %v1847_v20 = vrot.slane %v1653_v6, %v1668_v10 }
  0x1f   : > { %3185 = vst [vmem:[#allocation7_spill] sm:$0xff] %v1699_v21  ;;  %3186 = vst [vmem:[#allocation8_spill] sm:$0xff] %v1703_v22 }
  0x20   : > { %3187 = vst [vmem:[#allocation9_spill] sm:$0xff] %v1707_v23  ;;  %270 = vst [vmem:[#allocation2 + $0x33] sm:$0xff] %v1687_v17 }
  0x21   : > { %271 = vst [vmem:[#allocation2 + $0x43] sm:$0xff] %v1689_v18  ;;  %272 = vst [vmem:[#allocation2 + $0x53] sm:$0xff] %v1691_v19 }
  0x22   : > { %3188 = vst [vmem:[#allocation10_spill] sm:$0xff] %v1712_v24  ;;  %3189 = vst [vmem:[#allocation11_spill] sm:$0xff] %v1714_v25 }
  0x23   : > { %3190 = vst [vmem:[#allocation12_spill] sm:$0xff] %v1716_v26  ;;  %3191 = vst [vmem:[#allocation13_spill] sm:$0xff] %v1720_v27 }
  0x24   : > { %3192 = vst [vmem:[#allocation14_spill] sm:$0xff] %v1724_v28  ;;  %3193 = vst [vmem:[#allocation15_spill] sm:$0xff] %v1728_v29 }
  0x25   : > { %3194 = vst [vmem:[#allocation16_spill] sm:$0xff] %v1732_v30  ;;  %273 = vst [vmem:[#allocation2 + $0x63] sm:$0xff] %v1712_v24 }
  0x26   : > { %274 = vst [vmem:[#allocation2 + $0x73] sm:$0xff] %v1714_v25  ;;  %275 = vst [vmem:[#allocation2 + $0x83] sm:$0xff] %v1716_v26  ;;  %v1851_v26 = vrot.slane %v1658_v7, %v1670_v11 }
  0x27   : > { %3195 = vst [vmem:[#allocation17_spill] sm:$0xff] %v1737_v31  ;;  %3196 = vst [vmem:[#allocation18_spill] sm:$0xff] %v1740_v33  ;;  %v1831_v4 = vld [vmem:[#allocation2 + $0x30] sm:$0xff] }
  0x28   : > { %3197 = vst [vmem:[#allocation19_spill] sm:$0xff] %v1748_v37  ;;  %276 = vst [vmem:[#allocation2 + $0x93] sm:$0xff] %v1737_v31  ;;  %v1835_v36 = vld [vmem:[#allocation2 + $0x41] sm:$0xff]  ;;  %v1843_v31 = vrot.slane %v1653_v6, %v1666_v9  ;;  %v1853_v21 = vld [vmem:[#allocation2 + $0x50] sm:$0xff] }
  0x29   : > { %277 = vst [vmem:[#allocation2 + $0xa3] sm:$0xff] %v268_v32  ;;  %3198 = vst [vmem:[#allocation20_spill] sm:$0xff] %v1751_v38  ;;  %v1833_v32 = vld [vmem:[#allocation2 + $0x40] sm:$0xff]  ;;  %v1855_v25 = vld [vmem:[#allocation2 + $0x51] sm:$0xff]  ;;  %v371_v30 = vmul.f32 %v1724_v28, %v1853_v21 }
  0x2a   : > { %3199 = vst [vmem:[#allocation21_spill] sm:$0xff] %v1756_v40  ;;  %3200 = vst [vmem:[#allocation22_spill] sm:$0xff] %v1760_v41  ;;  %v525_v38 = vmul.f32 %v1772_v46, %v1855_v25 }
  0x2b   : > { %3201 = vst [vmem:[#allocation23_spill] sm:$0xff] %v1764_v42  ;;  %3202 = vst [vmem:[#allocation24_spill] sm:$0xff] %v1766_v44  ;;  %v379_v28 = vadd.f32 %v371_v30, %v1743_v34  ;;  %v1896_v30 = vld [vmem:[#allocation2 + $0x32] sm:$0xff] }
  0x2c   : > { %3203 = vst [vmem:[#allocation25_spill] sm:$0xff] %v1772_v46  ;;  %3204 = vst [vmem:[#allocation26_spill] sm:$0xff] %v1776_v47  ;;  %v1866_v40 = vld [vmem:[#allocation2 + $0x60] sm:$0xff] }
  0x2d   : > { %3205 = vst [vmem:[#allocation27_spill] sm:$0xff] %v1778_v48  ;;  %3206 = vst [vmem:[#allocation28_spill] sm:$0xff] %v1780_v49  ;;  %v351_v49 = vmul.f32 %v1720_v27, %v1833_v32  ;;  %v733_v48 = vmul.f32 %v1825_v0, %v715_v59  ;;  %v1868_v37 = vld [vmem:[#allocation2 + $0x61] sm:$0xff] }
  0x2e   : > { %3207 = vst [vmem:[#allocation29_spill] sm:$0xff] %v1784_v50  ;;  %3208 = vst [vmem:[#allocation30_spill] sm:$0xff] %v1790_v52  ;;  %v339_v52 = vmul.f32 %v1707_v23, %v1831_v4  ;;  %v505_v50 = vmul.f32 %v1764_v42, %v1835_v36  ;;  %v1870_v44 = vld [vmem:[#allocation2 + $0x62] sm:$0xff]  ;;  %v753_v42 = vmul.f32 %v1829_v1, %v1819_v62 }
  0x2f   : > { %3209 = vst [vmem:[#allocation31_spill] sm:$0xff] %v1794_v53  ;;  %3210 = vst [vmem:[#allocation32_spill] sm:$0xff] %v1798_v54  ;;  %v1857_v53 = vld [vmem:[#allocation2 + $0x52] sm:$0xff]  ;;  %v359_v59 = vadd.f32 %v351_v49, %v1740_v33  ;;  %v545_v23 = vmul.f32 %v1776_v47, %v1868_v37  ;;  %v699_v46 = vmul.f32 %v1813_v58, %v1870_v44 }
  0x30   : > { %3211 = vst [vmem:[#allocation33_spill] sm:$0xff] %v1805_v56  ;;  %3212 = vst [vmem:[#allocation34_spill] sm:$0xff] %v1809_v57  ;;  %v679_v27 = vmul.f32 %v1809_v57, %v1857_v53  ;;  %v773_v57 = vmul.f32 %v1839_v43, %v1821_v63  ;;  %v473_v47 = vadd.f32 %v465_v51, %v379_v28 }
  0x31   : > { %3213 = vst [vmem:[#allocation35_spill] sm:$0xff] %v1813_v58  ;;  %3214 = vst [vmem:[#allocation36_spill] sm:$0xff] %v1819_v62  ;;  %v453_v49 = vadd.f32 %v445_v45, %v359_v59  ;;  %v639_v51 = vmul.f32 %v1798_v54, %v1896_v30 }
  0x32   : > { %3215 = vst [vmem:[#allocation37_spill] sm:$0xff] %v1821_v63  ;;  %3216 = vst [vmem:[#allocation38_spill] sm:$0xff] %v1825_v0  ;;  %v391_v0 = vmul.f32 %v1728_v29, %v1866_v40  ;;  %v1921_v63 = vld [vmem:[#allocation2 + $0x24] sm:$0xff] }
  0x33   : > { %3217 = vst [vmem:[#allocation39_spill] sm:$0xff] %v1829_v1  ;;  %3218 = vst [vmem:[#allocation40_spill] sm:$0xff] %v1831_v4  ;;  %v793_v1 = vmul.f32 %v1843_v31, %v1687_v17 }
  0x34   : > { %3219 = vst [vmem:[#allocation41_spill] sm:$0xff] %v1833_v32  ;;  %3220 = vst [vmem:[#allocation42_spill] sm:$0xff] %v1835_v36  ;;  %v433_v36 = vadd.f32 %v425_v39, %v339_v52  ;;  %v399_v62 = vadd.f32 %v391_v0, %v327_v35  ;;  %v813_v39 = vmul.f32 %v1847_v20, %v1689_v18  ;;  %v869_v52 = vld [vmem:[#allocation2 + $0x4] sm:$0xff] }
  0x35   : > { %3221 = vst [vmem:[#allocation43_spill] sm:$0xff] %v1839_v43  ;;  %3222 = vst [vmem:[#allocation44_spill] sm:$0xff] %v1843_v31  ;;  %v833_v43 = vmul.f32 %v1851_v26, %v1691_v19  ;;  %v1904_v31 = vrot.slane %v1664_v8, %v1672_v12  ;;  %v1908_v35 = vrot.slane %v1638_v2, %v1679_v13 }
  0x36   : > { %3223 = vst [vmem:[#allocation45_spill] sm:$0xff] %v1847_v20  ;;  %3224 = vst [vmem:[#allocation46_spill] sm:$0xff] %v1851_v26  ;;  %v553_v0 = vadd.f32 %v545_v23, %v473_v47  ;;  %v1918_v26 = vld [vmem:[#allocation2 + $0x14] sm:$0xff]  ;;  %v1929_v23 = vrot.slane %v1643_v3, %v1681_v14 }
  0x37   : > { %3225 = vst [vmem:[#allocation47_spill] sm:$0xff] %v1853_v21  ;;  %3226 = vst [vmem:[#allocation48_spill] sm:$0xff] %v1855_v25  ;;  %v1894_v25 = vld [vmem:[#allocation2 + $0x31] sm:$0xff]  ;;  %v853_v59 = vmul.f32 %v1904_v31, %v1712_v24  ;;  %v887_v20 = vmul.f32 %v1908_v35, %v869_v52 }
  0x38   : > { %3227 = vst [vmem:[#allocation49_spill] sm:$0xff] %v1857_v53  ;;  %3228 = vst [vmem:[#allocation50_spill] sm:$0xff] %v1866_v40  ;;  %v513_v53 = vadd.f32 %v505_v50, %v433_v36  ;;  %v485_v45 = vmul.f32 %v1760_v41, %v1894_v25  ;;  %v533_v50 = vadd.f32 %v525_v38, %v453_v49  ;;  %v1923_v38 = vld [vmem:[#allocation2 + $0x34] sm:$0xff] }
  0x39   : > { %3229 = vst [vmem:[#allocation51_spill] sm:$0xff] %v1868_v37  ;;  %3230 = vst [vmem:[#allocation52_spill] sm:$0xff] %v1870_v44  ;;  %v1898_v37 = vld [vmem:[#allocation2 + $0x42] sm:$0xff]  ;;  %v647_v47 = vadd.f32 %v639_v51, %v553_v0 }
  0x3a   : > { %3231 = vst [vmem:[#allocation53_spill] sm:$0xff] %v1894_v25  ;;  %3232 = vst [vmem:[#allocation54_spill] sm:$0xff] %v1898_v37  ;;  %v607_v28 = vadd.f32 %v599_v60, %v513_v53  ;;  %v659_v36 = vmul.f32 %v1805_v56, %v1898_v37  ;;  %v493_v19 = vadd.f32 %v485_v45, %v399_v62  ;;  %v1925_v53 = vld [vmem:[#allocation2 + $0x44] sm:$0xff] }
  0x3b   : > { %3233 = vst [vmem:[#allocation55_spill] sm:$0xff] %v1904_v31  ;;  %3234 = vst [vmem:[#allocation56_spill] sm:$0xff] %v1908_v35  ;;  %v627_v18 = vadd.f32 %v619_v61, %v533_v50  ;;  %v1933_v60 = vrot.slane %v1648_v5, %v1683_v15  ;;  %v1937_v62 = vrot.slane %v1653_v6, %v1685_v16 }
  0x3c   : > { %v687_v17 = vadd.f32 %v679_v27, %v607_v28  ;;  %3235 = vst [vmem:[#allocation57_spill] sm:$0xff] %v1925_v53  ;;  %3236 = vst [vmem:[#allocation58_spill] sm:$0xff] %v1929_v23  ;;  %v1941_v27 = vrot.slane %v1658_v7, %v1666_v9  ;;  %v587_v61 = vadd.f32 %v1801_v55, %v493_v19  ;;  %v1946_v28 = vld [vmem:[#allocation2 + $0x54] sm:$0xff] }
  0x3d   : > { %3237 = vst [vmem:[#allocation59_spill] sm:$0xff] %v1933_v60  ;;  %3238 = vst [vmem:[#allocation60_spill] sm:$0xff] %v1937_v62  ;;  %v707_v49 = vadd.f32 %v699_v46, %v627_v18  ;;  %v907_v45 = vmul.f32 %v1929_v23, %v1918_v26  ;;  %v741_v50 = vadd.f32 %v733_v48, %v647_v47  ;;  %v1954_v18 = vld [vmem:[#allocation2 + $0x64] sm:$0xff]  ;;  %v1960_v48 = vld [vmem:[#allocation2 + $0x15] sm:$0xff] }
  0x3e   : > { %3239 = vst [vmem:[#allocation61_spill] sm:$0xff] %v1941_v27  ;;  %v781_v52 = vadd.f32 %v773_v57, %v687_v17  ;;  %v927_v51 = vmul.f32 %v1933_v60, %v1921_v63  ;;  %v947_v0 = vmul.f32 %v1937_v62, %v1923_v38  ;;  %v967_v35 = vmul.f32 %v1941_v27, %v1925_v53  ;;  %v1023_v46 = vld [vmem:[#allocation2 + $0x5] sm:$0xff]  ;;  %v1980_v27 = vld [vmem:[#allocation2 + $0x35] sm:$0xff] }
  0x3f   : > { %v667_v31 = vadd.f32 %v659_v36, %v587_v61  ;;  %v801_v24 = vadd.f32 %v793_v1, %v707_v49  ;;  %3240 = vst [vmem:[#allocation62_spill] sm:$0xff] %v1954_v18  ;;  %v1958_v17 = vrot.slane %v1658_v7, %v1668_v10  ;;  %v821_v55 = vadd.f32 %v813_v39, %v741_v50  ;;  %v1978_v50 = vld [vmem:[#allocation2 + $0x25] sm:$0xff] }
  0x40   : > { %v861_v19 = vadd.f32 %v853_v59, %v781_v52  ;;  %v1964_v57 = vrot.slane %v1664_v8, %v1670_v11  ;;  %v1968_v47 = vrot.slane %v1638_v2, %v1672_v12  ;;  %v1972_v1 = vrot.slane %v1643_v3, %v1679_v13 }
  0x41   : > { %3241 = vst [vmem:[#allocation63_spill] sm:$0xff] %v1958_v17  ;;  %v761_v36 = vadd.f32 %v753_v42, %v667_v31  ;;  %v895_v59 = vadd.f32 %v887_v20, %v801_v24  ;;  %v987_v49 = vmul.f32 %v1958_v17, %v1946_v28  ;;  %v915_v52 = vadd.f32 %v907_v45, %v821_v55  ;;  %v1985_v20 = vld [vmem:[#allocation2 + $0x45] sm:$0xff]  ;;  %v1987_v24 = vld [vmem:[#allocation2 + $0x55] sm:$0xff] }
  0x42   : > { %3242 = vst [vmem:[#allocation64_spill] sm:$0xff] %v1964_v57  ;;  %3243 = vst [vmem:[#allocation65_spill] sm:$0xff] %v1968_v47  ;;  %v955_v61 = vadd.f32 %v947_v0, %v861_v19  ;;  %v1007_v39 = vmul.f32 %v1964_v57, %v1954_v18  ;;  %v1041_v62 = vmul.f32 %v1968_v47, %v1023_v46  ;;  %v2005_v55 = vld [vmem:[#allocation2 + $0x65] sm:$0xff] }
  0x43   : > { %3244 = vst [vmem:[#allocation66_spill] sm:$0xff] %v1972_v1  ;;  %v1061_v53 = vmul.f32 %v1972_v1, %v1960_v48  ;;  %v841_v60 = vadd.f32 %v833_v43, %v761_v36  ;;  %v975_v31 = vadd.f32 %v967_v35, %v895_v59  ;;  %3245 = vst [vmem:[#allocation67_spill] sm:$0xff] %v1985_v20 }
  0x44   : > { %3246 = vst [vmem:[#allocation68_spill] sm:$0xff] %v1987_v24  ;;  %v1991_v42 = vrot.slane %v1648_v5, %v1681_v14  ;;  %v1995_v45 = vrot.slane %v1653_v6, %v1683_v15  ;;  %v995_v0 = vadd.f32 %v987_v49, %v915_v52  ;;  %v1049_v19 = vadd.f32 %v1041_v62, %v955_v61  ;;  %v1177_v49 = vld [vmem:[#allocation2 + $0x6] sm:$0xff]  ;;  %v2030_v52 = vld [vmem:[%s2900_s1 + $0x30] ss:$0 sm:$0xff] }
  0x45   : > { %v1999_v46 = vrot.slane %v1658_v7, %v1685_v16  ;;  %v2003_v43 = vrot.slane %v1664_v8, %v1666_v9  ;;  %v935_v35 = vadd.f32 %v927_v51, %v841_v60  ;;  %3251 = vst [vmem:[#allocation73_spill] sm:$0xff] %v2005_v55  ;;  %v1069_v36 = vadd.f32 %v1061_v53, %v975_v31  ;;  %v2019_v60 = vld [vmem:[#allocation2 + $0x16] sm:$0xff]  ;;  %v2021_v53 = vld [vmem:[#allocation2 + $0x26] sm:$0xff] }
  0x46   : > { %3247 = vst [vmem:[#allocation69_spill] sm:$0xff] %v1991_v42  ;;  %3248 = vst [vmem:[#allocation70_spill] sm:$0xff] %v1995_v45  ;;  %v1081_v59 = vmul.f32 %v1991_v42, %v1978_v50  ;;  %v1101_v1 = vmul.f32 %v1995_v45, %v1980_v27  ;;  %v2017_v9 = vrot.slane %v1664_v8, %v1668_v10 }
  0x47   : > { %3249 = vst [vmem:[#allocation71_spill] sm:$0xff] %v1999_v46  ;;  %3250 = vst [vmem:[#allocation72_spill] sm:$0xff] %v2003_v43  ;;  %v1121_v62 = vmul.f32 %v1999_v46, %v1985_v20  ;;  %v1141_v61 = vmul.f32 %v2003_v43, %v1987_v24  ;;  %v2025_v51 = vrot.slane %v1638_v2, %v1670_v11  ;;  %v2032_v43 = vld [vmem:[#allocation2 + $0x66] sm:$0xff]  ;;  %v2044_v20 = vld [vmem:[#allocation2 + $0x36] sm:$0xff] }
  0x48   : > { %3252 = vst [vmem:[#allocation74_spill] sm:$0xff] %v2017_v9  ;;  %3254 = vst [vmem:[#allocation76_spill] sm:$0xff] %v2030_v52  ;;  %v1015_v31 = vadd.f32 %v1007_v39, %v935_v35  ;;  %v1089_v46 = vadd.f32 %v1081_v59, %v995_v0  ;;  %v2036_v10 = vrot.slane %v1643_v3, %v1672_v12  ;;  %v2047_v35 = vld [vmem:[#allocation2 + $0x46] sm:$0xff]  ;;  %v2049_v59 = vld [vmem:[#allocation2 + $0x56] sm:$0xff] }
  0x49   : > { %3253 = vst [vmem:[#allocation75_spill] sm:$0xff] %v2025_v51  ;;  %3255 = vst [vmem:[#allocation77_spill] sm:$0xff] %v2032_v43  ;;  %v2040_v24 = vrot.slane %v1648_v5, %v1679_v13  ;;  %v1129_v45 = vadd.f32 %v1121_v62, %v1049_v19  ;;  %v1149_v2 = vadd.f32 %v1141_v61, %v1069_v36 }
  0x4a   : > { %3256 = vst [vmem:[#allocation78_spill] sm:$0xff] %v2036_v10  ;;  %v1161_v11 = vmul.f32 %v2017_v9, %v2005_v55  ;;  %3258 = vst [vmem:[#allocation80_spill] sm:$0xff] %v2044_v20  ;;  %v1195_v39 = vmul.f32 %v2025_v51, %v1177_v49  ;;  %v1109_v0 = vadd.f32 %v1101_v1, %v1015_v31  ;;  %v2069_v49 = vld [vmem:[#allocation2 + $0x70] sm:$0xff] }
  0x4b   : > { %3257 = vst [vmem:[#allocation79_spill] sm:$0xff] %v2040_v24  ;;  %3259 = vst [vmem:[#allocation81_spill] sm:$0xff] %v2047_v35  ;;  %v1215_v3 = vmul.f32 %v2036_v10, %v2019_v60  ;;  %v1235_v5 = vmul.f32 %v2040_v24, %v2021_v53  ;;  %v2057_v12 = vrot.slane %v1653_v6, %v1681_v14 }
  0x4c   : > { %3260 = vst [vmem:[#allocation82_spill] sm:$0xff] %v2049_v59  ;;  %v1169_v13 = vadd.f32 %v1161_v11, %v1089_v46  ;;  %v2061_v19 = vrot.slane %v1658_v7, %v1683_v15  ;;  %v2065_v1 = vrot.slane %v1664_v8, %v1685_v16  ;;  %v1315_v36 = vmul.f32 %v2030_v52, %v2032_v43  ;;  %v3265_v15 = vld [vmem:[#allocation9_spill] sm:$0xff]  ;;  %v3269_v43 = vld [vmem:[#allocation16_spill] sm:$0xff] }
  0x4d   : > { %3261 = vst [vmem:[#allocation83_spill] sm:$0xff] %v2057_v12  ;;  %3264 = vst [vmem:[#allocation86_spill] sm:$0xff] %v2069_v49  ;;  %v1203_v62 = vadd.f32 %v1195_v39, %v1109_v0  ;;  %v1223_v61 = vadd.f32 %v1215_v3, %v1129_v45  ;;  %v1243_v31 = vadd.f32 %v1235_v5, %v1149_v2  ;;  %v3266_v45 = vld [vmem:[#allocation13_spill] sm:$0xff]  ;;  %v3267_v39 = vld [vmem:[#allocation14_spill] sm:$0xff] }
  0x4e   : > { %3262 = vst [vmem:[#allocation84_spill] sm:$0xff] %v2061_v19  ;;  %3263 = vst [vmem:[#allocation85_spill] sm:$0xff] %v2065_v1  ;;  %v1255_v6 = vmul.f32 %v2057_v12, %v2044_v20  ;;  %v1275_v14 = vmul.f32 %v2061_v19, %v2047_v35  ;;  %v1295_v7 = vmul.f32 %v2065_v1, %v2049_v59  ;;  %v3268_v1 = vld [vmem:[#allocation20_spill] sm:$0xff] }
  0x4f   : > { %v328_v8 = vmul.f32 %v1703_v22, %v1831_v4  ;;  %v340_v16 = vmul.f32 %v3265_v15, %v1833_v32  ;;  %v1323_v11 = vadd.f32 %v1315_v36, %v1243_v31  ;;  %v352_v2 = vmul.f32 %v3266_v45, %v1853_v21  ;;  %v2089_v22 = vld [vmem:[#allocation2 + $0x71] sm:$0xff]  ;;  %v3271_v31 = vld [vmem:[#allocation24_spill] sm:$0xff] }
  0x50   : > { %v1263_v46 = vadd.f32 %v1255_v6, %v1169_v13  ;;  %v372_v0 = vmul.f32 %v3267_v39, %v1866_v40  ;;  %v1283_v3 = vadd.f32 %v1275_v14, %v1203_v62  ;;  %v1303_v5 = vadd.f32 %v1295_v7, %v1223_v61  ;;  %3270 = vst [vmem:[#allocation20_spill] sm:$0xff] %v2089_v22  ;;  %v3272_v6 = vld [vmem:[#allocation19_spill] sm:$0xff]  ;;  %v3273_v14 = vld [vmem:[#allocation21_spill] sm:$0xff] }
  0x51   : > { %v392_v52 = vmul.f32 %v1728_v29, %v2069_v49  ;;  %v426_v19 = vmul.f32 %v3269_v43, %v3268_v1  ;;  %v360_v13 = vadd.f32 %v352_v2, %v1740_v33  ;;  %v446_v45 = vmul.f32 %v3272_v6, %v3271_v31  ;;  %v2100_v1 = vld [vmem:[%s2901_s2] ss:$0 sm:$0xff]  ;;  %v3279_v6 = vld [vmem:[#allocation25_spill] sm:$0xff] }
  0x52   : > { %v1331_v4 = vadd.f32 %v1323_v11, %v1263_v46  ;;  %v380_v36 = vadd.f32 %v372_v0, %v1743_v34  ;;  %v1339_v39 = vadd.f32 %v1303_v5, %v1283_v3  ;;  %v466_v7 = vmul.f32 %v3273_v14, %v1894_v25  ;;  %3274 = vst [vmem:[#allocation87_spill] sm:$0xff] %v2100_v1  ;;  %v3275_v11 = vld [vmem:[#allocation42_spill] sm:$0xff]  ;;  %v3276_v34 = vld [vmem:[#allocation48_spill] sm:$0xff]  ;;  %v3277_v0 = vld [vmem:[#allocation23_spill] sm:$0xff] }
  0x53   : > { %v400_v62 = vadd.f32 %v392_v52, %v328_v8  ;;  %v434_v61 = vadd.f32 %v426_v19, %v340_v16  ;;  %v454_v46 = vadd.f32 %v446_v45, %v360_v13  ;;  %v486_v2 = vmul.f32 %v1760_v41, %v3275_v11  ;;  %v3278_v43 = vld [vmem:[#allocation51_spill] sm:$0xff]  ;;  %v3280_v8 = vld [vmem:[#allocation26_spill] sm:$0xff]  ;;  %v3282_v14 = vld [vmem:[#allocation29_spill] sm:$0xff] }
  0x54   : > { %v506_v33 = vmul.f32 %v3277_v0, %v3276_v34  ;;  %v526_v3 = vmul.f32 %v3279_v6, %v3278_v43  ;;  %v1347_v52 = vadd.f32 %v1339_v39, %v1331_v4  ;;  %v474_v19 = vadd.f32 %v466_v7, %v380_v36  ;;  %v3281_v5 = vld [vmem:[#allocation27_spill] sm:$0xff]  ;;  %v2112_v31 = vld [vmem:[#allocation2 + $0x72] sm:$0xff]  ;;  %v3284_v4 = vld [vmem:[#allocation28_spill] sm:$0xff] }
  0x55   : > { %v546_v16 = vmul.f32 %v3280_v8, %v2089_v22  ;;  %v580_v25 = vmul.f32 %v3282_v14, %v3281_v5  ;;  %3283 = vst [vmem:[#allocation42_spill] sm:$0xff] %v2112_v31  ;;  %v494_v45 = vadd.f32 %v486_v2, %v400_v62  ;;  %v3285_v39 = vld [vmem:[#allocation30_spill] sm:$0xff]  ;;  %v3286_v5 = vld [vmem:[#allocation31_spill] sm:$0xff]  ;;  %v640_v22 = vmul.f32 %v1798_v54, %v1898_v37  ;;  %v3287_v41 = vld [vmem:[#allocation49_spill] sm:$0xff] }
  0x56   : > { %v514_v13 = vadd.f32 %v506_v33, %v434_v61  ;;  %v534_v6 = vadd.f32 %v526_v3, %v454_v46  ;;  %v600_v36 = vmul.f32 %v3285_v39, %v3284_v4  ;;  %v1362_v7 = vadd.f32 %v2100_v1, %v1347_v52  ;;  %v3288_v33 = vld [vmem:[#allocation34_spill] sm:$0xff]  ;;  %v3289_v3 = vld [vmem:[#allocation36_spill] sm:$0xff]  ;;  %v3291_v54 = vld [vmem:[#allocation37_spill] sm:$0xff] }
  0x57   : > { %v554_v8 = vadd.f32 %v546_v16, %v474_v19  ;;  %v620_v14 = vmul.f32 %v3286_v5, %v1896_v30  ;;  %v588_v0 = vadd.f32 %v580_v25, %v494_v45  ;;  %v660_v34 = vmul.f32 %v1805_v56, %v3287_v41  ;;  %v3290_v52 = vld [vmem:[#allocation38_spill] sm:$0xff]  ;;  %v3292_v25 = vld [vmem:[#allocation39_spill] sm:$0xff] }
  0x58   : > { %v608_v43 = vadd.f32 %v600_v36, %v514_v13  ;;  %v680_v62 = vmul.f32 %v3288_v33, %v1870_v44  ;;  %1370 = vst [vmem:[%s2119_s11] sm:$0xff] %v1362_v7  ;;  %v700_v2 = vmul.f32 %v1813_v58, %v2112_v31  ;;  %v734_v19 = vmul.f32 %v3290_v52, %v3289_v3  ;;  %v3293_v13 = vld [vmem:[#allocation3_spill] sm:$0xff]  ;;  %v3295_v33 = vld [vmem:[#allocation4_spill] sm:$0xff]  ;;  %v3299_v44 = vld [vmem:[#allocation10_spill] sm:$0xff] }
  0x59   : > { %v628_v61 = vadd.f32 %v620_v14, %v534_v6  ;;  %v648_v46 = vadd.f32 %v640_v22, %v554_v8  ;;  %v668_v16 = vadd.f32 %v660_v34, %v588_v0  ;;  %v754_v45 = vmul.f32 %v3292_v25, %v3291_v54  ;;  %v3294_v36 = vld [vmem:[#allocation43_spill] sm:$0xff]  ;;  %v3296_v7 = vld [vmem:[#allocation44_spill] sm:$0xff]  ;;  %v3297_v22 = vld [vmem:[#allocation5_spill] sm:$0xff] }
  0x5a   : > { %v688_v5 = vadd.f32 %v680_v62, %v608_v43  ;;  %v774_v56 = vmul.f32 %v3294_v36, %v3293_v13  ;;  %v794_v6 = vmul.f32 %v3296_v7, %v3295_v33  ;;  %v3298_v14 = vld [vmem:[#allocation45_spill] sm:$0xff]  ;;  %v3300_v3 = vld [vmem:[#allocation46_spill] sm:$0xff]  ;;  %v3301_v43 = vld [vmem:[#allocation11_spill] sm:$0xff] }
  0x5b   : > { %v708_v41 = vadd.f32 %v700_v2, %v628_v61  ;;  %v742_v37 = vadd.f32 %v734_v19, %v648_v46  ;;  %v814_v8 = vmul.f32 %v3298_v14, %v3297_v22  ;;  %v762_v58 = vadd.f32 %v754_v45, %v668_v16  ;;  %v3302_v0 = vld [vmem:[#allocation55_spill] sm:$0xff]  ;;  %v2149_v54 = vld [vmem:[#allocation2 + $0x74] sm:$0xff]  ;;  %v3304_v61 = vld [vmem:[#allocation56_spill] sm:$0xff] }
  0x5c   : > { %v782_v31 = vadd.f32 %v774_v56, %v688_v5  ;;  %v834_v34 = vmul.f32 %v3300_v3, %v3299_v44  ;;  %v854_v62 = vmul.f32 %v3302_v0, %v3301_v43  ;;  %3303 = vst [vmem:[#allocation27_spill] sm:$0xff] %v2149_v54  ;;  %v888_v46 = vmul.f32 %v3304_v61, %v1918_v26  ;;  %v3305_v56 = vld [vmem:[#allocation59_spill] sm:$0xff]  ;;  %v3306_v16 = vld [vmem:[#allocation57_spill] sm:$0xff]  ;;  %v3307_v45 = vld [vmem:[#allocation60_spill] sm:$0xff] }
  0x5d   : > { %v802_v25 = vadd.f32 %v794_v6, %v708_v41  ;;  %v822_v52 = vadd.f32 %v814_v8, %v742_v37  ;;  %v908_v2 = vmul.f32 %v1929_v23, %v1921_v63  ;;  %v928_v5 = vmul.f32 %v3305_v56, %v1923_v38  ;;  %v3308_v37 = vld [vmem:[#allocation61_spill] sm:$0xff] }
  0x5e   : > { %v842_v19 = vadd.f32 %v834_v34, %v762_v58  ;;  %v862_v14 = vadd.f32 %v854_v62, %v782_v31  ;;  %v948_v3 = vmul.f32 %v3307_v45, %v3306_v16  ;;  %v968_v41 = vmul.f32 %v3308_v37, %v1946_v28  ;;  %v2165_v31 = vld [vmem:[#allocation2 + $0x75] sm:$0xff] }
  0x5f   : > { %v896_v44 = vadd.f32 %v888_v46, %v802_v25  ;;  %v916_v0 = vadd.f32 %v908_v2, %v822_v52  ;;  %v988_v6 = vmul.f32 %v1958_v17, %v1954_v18  ;;  %v1008_v58 = vmul.f32 %v1964_v57, %v2149_v54  ;;  %3309 = vst [vmem:[#allocation28_spill] sm:$0xff] %v2165_v31  ;;  %v3310_v52 = vld [vmem:[#allocation66_spill] sm:$0xff]  ;;  %v3314_v57 = vld [vmem:[#allocation71_spill] sm:$0xff] }
  0x60   : > { %v936_v26 = vadd.f32 %v928_v5, %v842_v19  ;;  %v956_v8 = vadd.f32 %v948_v3, %v862_v14  ;;  %v1042_v34 = vmul.f32 %v1968_v47, %v1960_v48  ;;  %v1062_v25 = vmul.f32 %v3310_v52, %v1978_v50  ;;  %v3311_v19 = vld [vmem:[#allocation67_spill] sm:$0xff]  ;;  %v3312_v14 = vld [vmem:[#allocation70_spill] sm:$0xff]  ;;  %v3313_v5 = vld [vmem:[#allocation68_spill] sm:$0xff] }
  0x61   : > { %v976_v62 = vadd.f32 %v968_v41, %v896_v44  ;;  %v996_v45 = vadd.f32 %v988_v6, %v916_v0  ;;  %v1082_v46 = vmul.f32 %v1991_v42, %v1980_v27  ;;  %v1102_v3 = vmul.f32 %v3312_v14, %v3311_v19  ;;  %v3315_v48 = vld [vmem:[#allocation72_spill] sm:$0xff]  ;;  %v2181_v52 = vld [vmem:[#allocation2 + $0x76] sm:$0xff] }
  0x62   : > { %v1016_v2 = vadd.f32 %v1008_v58, %v936_v26  ;;  %v1050_v17 = vadd.f32 %v1042_v34, %v956_v8  ;;  %v1122_v54 = vmul.f32 %v3314_v57, %v3313_v5  ;;  %v1142_v44 = vmul.f32 %v3315_v48, %v2005_v55  ;;  %3316 = vst [vmem:[#allocation36_spill] sm:$0xff] %v2181_v52 }
  0x63   : > { %v1070_v37 = vadd.f32 %v1062_v25, %v976_v62  ;;  %v1090_v18 = vadd.f32 %v1082_v46, %v996_v45  ;;  %v1162_v0 = vmul.f32 %v2017_v9, %v2165_v31  ;;  %v1196_v26 = vmul.f32 %v2025_v51, %v2019_v60  ;;  %v2191_v25 = vld [vmem:[#allocation2 + $0x80] sm:$0xff]  ;;  %v3320_v60 = vld [vmem:[#allocation85_spill] sm:$0xff] }
  0x64   : > { %v1110_v41 = vadd.f32 %v1102_v3, %v1016_v2  ;;  %v1130_v6 = vadd.f32 %v1122_v54, %v1050_v17  ;;  %v1216_v8 = vmul.f32 %v2036_v10, %v2021_v53  ;;  %v1236_v45 = vmul.f32 %v2040_v24, %v2044_v20  ;;  %3317 = vst [vmem:[#allocation4_spill] sm:$0xff] %v2191_v25  ;;  %v3318_v17 = vld [vmem:[#allocation84_spill] sm:$0xff]  ;;  %v3319_v3 = vld [vmem:[#allocation77_spill] sm:$0xff] }
  0x65   : > { %v1150_v58 = vadd.f32 %v1142_v44, %v1070_v37  ;;  %v1170_v34 = vadd.f32 %v1162_v0, %v1090_v18  ;;  %v1256_v62 = vmul.f32 %v2057_v12, %v2047_v35  ;;  %v1276_v2 = vmul.f32 %v3318_v17, %v2049_v59  ;;  %v3321_v18 = vld [vmem:[#allocation76_spill] sm:$0xff]  ;;  %v3323_v0 = vld [vmem:[#allocation7_spill] sm:$0xff] }
  0x66   : > { %v1204_v46 = vadd.f32 %v1196_v26, %v1110_v41  ;;  %v1224_v54 = vadd.f32 %v1216_v8, %v1130_v6  ;;  %v1296_v51 = vmul.f32 %v3320_v60, %v3319_v3  ;;  %v1316_v37 = vmul.f32 %v3321_v18, %v2181_v52  ;;  %v3322_v44 = vld [vmem:[#allocation40_spill] sm:$0xff]  ;;  %v3325_v8 = vld [vmem:[#allocation13_spill] sm:$0xff]  ;;  %v3336_v18 = vld [vmem:[#allocation51_spill] sm:$0xff] }
  0x67   : > { %v1244_v9 = vadd.f32 %v1236_v45, %v1150_v58  ;;  %v1264_v10 = vadd.f32 %v1256_v62, %v1170_v34  ;;  %v317_v24 = vmul.f32 %v3323_v0, %v3322_v44  ;;  %v3324_v35 = vld [vmem:[#allocation8_spill] sm:$0xff]  ;;  %v341_v6 = vmul.f32 %v3265_v15, %v1853_v21  ;;  %v3326_v58 = vld [vmem:[#allocation14_spill] sm:$0xff]  ;;  %v3331_v0 = vld [vmem:[#allocation19_spill] sm:$0xff] }
  0x68   : > { %v1284_v20 = vadd.f32 %v1276_v2, %v1204_v46  ;;  %v1304_v12 = vadd.f32 %v1296_v51, %v1224_v54  ;;  %v329_v41 = vmul.f32 %v3324_v35, %v1833_v32  ;;  %v353_v60 = vmul.f32 %v3325_v8, %v1866_v40  ;;  %v2211_v62 = vld [vmem:[#allocation2 + $0x81] sm:$0xff]  ;;  %v3330_v35 = vld [vmem:[#allocation53_spill] sm:$0xff]  ;;  %v3333_v8 = vld [vmem:[#allocation18_spill] sm:$0xff] }
  0x69   : > { %v1324_v26 = vadd.f32 %v1316_v37, %v1244_v9  ;;  %v373_v34 = vmul.f32 %v3326_v58, %v2069_v49  ;;  %v393_v45 = vmul.f32 %v1728_v29, %v2191_v25  ;;  %3327 = vst [vmem:[#allocation5_spill] sm:$0xff] %v2211_v62  ;;  %v3328_v51 = vld [vmem:[#allocation24_spill] sm:$0xff]  ;;  %v447_v32 = vmul.f32 %v3331_v0, %v3330_v35  ;;  %v3332_v9 = vld [vmem:[#allocation21_spill] sm:$0xff]  ;;  %v3335_v29 = vld [vmem:[#allocation22_spill] sm:$0xff] }
  0x6a   : > { %v1340_v46 = vadd.f32 %v1304_v12, %v1284_v20  ;;  %v3329_v54 = vld [vmem:[#allocation16_spill] sm:$0xff]  ;;  %v467_v37 = vmul.f32 %v3332_v9, %v3275_v11  ;;  %v361_v40 = vadd.f32 %v353_v60, %v3333_v8  ;;  %v3337_v20 = vld [vmem:[#allocation23_spill] sm:$0xff] }
  0x6b   : > { %v427_v2 = vmul.f32 %v3329_v54, %v3328_v51  ;;  %v1332_v15 = vadd.f32 %v1324_v26, %v1264_v10  ;;  %v381_v21 = vadd.f32 %v373_v34, %v317_v24  ;;  %v401_v58 = vadd.f32 %v393_v45, %v329_v41  ;;  %v3334_v44 = vld [vmem:[#allocation48_spill] sm:$0xff]  ;;  %v3339_v51 = vld [vmem:[#allocation25_spill] sm:$0xff]  ;;  %v3340_v10 = vld [vmem:[#allocation26_spill] sm:$0xff] }
  0x6c   : > { %v487_v25 = vmul.f32 %v3335_v29, %v3334_v44  ;;  %v507_v12 = vmul.f32 %v3337_v20, %v3336_v18  ;;  %v3338_v52 = vld [vmem:[#allocation20_spill] sm:$0xff]  ;;  %v455_v0 = vadd.f32 %v447_v32, %v361_v40  ;;  %v547_v26 = vmul.f32 %v3340_v10, %v2211_v62  ;;  %v3343_v40 = vld [vmem:[#allocation54_spill] sm:$0xff]  ;;  %v3344_v32 = vld [vmem:[#allocation31_spill] sm:$0xff] }
  0x6d   : > { %v435_v49 = vadd.f32 %v427_v2, %v341_v6  ;;  %v527_v54 = vmul.f32 %v3339_v51, %v3338_v52  ;;  %v1348_v17 = vadd.f32 %v1340_v46, %v1332_v15  ;;  %v475_v35 = vadd.f32 %v467_v37, %v381_v21  ;;  %v2228_v60 = vld [vmem:[#allocation2 + $0x82] sm:$0xff]  ;;  %v3342_v6 = vld [vmem:[#allocation29_spill] sm:$0xff] }
  0x6e   : > { %3341 = vst [vmem:[#allocation11_spill] sm:$0xff] %v2228_v60  ;;  %v495_v24 = vadd.f32 %v487_v25, %v401_v58  ;;  %v581_v8 = vmul.f32 %v3342_v6, %v3284_v4  ;;  %v601_v34 = vmul.f32 %v3285_v39, %v1896_v30  ;;  %v621_v21 = vmul.f32 %v3344_v32, %v3343_v40  ;;  %v3345_v10 = vld [vmem:[#allocation49_spill] sm:$0xff]  ;;  %v3346_v51 = vld [vmem:[#allocation32_spill] sm:$0xff]  ;;  %v3350_v6 = vld [vmem:[#allocation34_spill] sm:$0xff] }
  0x6f   : > { %v515_v41 = vadd.f32 %v507_v12, %v435_v49  ;;  %v1363_v45 = vadd.f32 %v2100_v1, %v1348_v17  ;;  %v535_v2 = vadd.f32 %v527_v54, %v455_v0  ;;  %v555_v15 = vadd.f32 %v547_v26, %v475_v35  ;;  %v3347_v25 = vld [vmem:[#allocation52_spill] sm:$0xff]  ;;  %v3348_v49 = vld [vmem:[#allocation33_spill] sm:$0xff]  ;;  %v3349_v12 = vld [vmem:[#allocation42_spill] sm:$0xff] }
  0x70   : > { %v589_v46 = vadd.f32 %v581_v8, %v495_v24  ;;  %v641_v62 = vmul.f32 %v3346_v51, %v3345_v10  ;;  %v661_v58 = vmul.f32 %v3348_v49, %v3347_v25  ;;  %v681_v39 = vmul.f32 %v3350_v6, %v3349_v12  ;;  %v3351_v17 = vld [vmem:[#allocation35_spill] sm:$0xff]  ;;  %v3352_v35 = vld [vmem:[#allocation37_spill] sm:$0xff]  ;;  %v3353_v54 = vld [vmem:[#allocation38_spill] sm:$0xff] }
  0x71   : > { %v609_v37 = vadd.f32 %v601_v34, %v515_v41  ;;  %1371 = vst [vmem:[%s2119_s11 + $0x8] sm:$0xff] %v1363_v45  ;;  %v629_v4 = vadd.f32 %v621_v21, %v535_v2  ;;  %v701_v0 = vmul.f32 %v3351_v17, %v2228_v60  ;;  %v735_v26 = vmul.f32 %v3353_v54, %v3352_v35  ;;  %v3354_v41 = vld [vmem:[#allocation39_spill] sm:$0xff]  ;;  %v3355_v21 = vld [vmem:[#allocation10_spill] sm:$0xff]  ;;  %v3356_v6 = vld [vmem:[#allocation45_spill] sm:$0xff] }
  0x72   : > { %v649_v32 = vadd.f32 %v641_v62, %v555_v15  ;;  %v669_v24 = vadd.f32 %v661_v58, %v589_v46  ;;  %v755_v8 = vmul.f32 %v3354_v41, %v3293_v13  ;;  %v775_v34 = vmul.f32 %v3294_v36, %v3295_v33  ;;  %v3357_v35 = vld [vmem:[#allocation46_spill] sm:$0xff]  ;;  %v3358_v15 = vld [vmem:[#allocation12_spill] sm:$0xff]  ;;  %v3359_v46 = vld [vmem:[#allocation55_spill] sm:$0xff] }
  0x73   : > { %v689_v49 = vadd.f32 %v681_v39, %v609_v37  ;;  %v709_v45 = vadd.f32 %v701_v0, %v629_v4  ;;  %v795_v2 = vmul.f32 %v3296_v7, %v3297_v22  ;;  %v815_v12 = vmul.f32 %v3356_v6, %v3355_v21  ;;  %v2260_v13 = vld [vmem:[#allocation2 + $0x84] sm:$0xff] }
  0x74   : > { %v743_v17 = vadd.f32 %v735_v26, %v649_v32  ;;  %v763_v60 = vadd.f32 %v755_v8, %v669_v24  ;;  %v835_v62 = vmul.f32 %v3357_v35, %v3301_v43  ;;  %v855_v58 = vmul.f32 %v3359_v46, %v3358_v15  ;;  %3360 = vst [vmem:[#allocation57_spill] sm:$0xff] %v2260_v13  ;;  %v3361_v26 = vld [vmem:[#allocation60_spill] sm:$0xff]  ;;  %v3365_v35 = vld [vmem:[#allocation63_spill] sm:$0xff] }
  0x75   : > { %v783_v41 = vadd.f32 %v775_v34, %v689_v49  ;;  %v803_v54 = vadd.f32 %v795_v2, %v709_v45  ;;  %v889_v39 = vmul.f32 %v3304_v61, %v1921_v63  ;;  %v909_v37 = vmul.f32 %v1929_v23, %v1923_v38  ;;  %v3362_v49 = vld [vmem:[#allocation62_spill] sm:$0xff]  ;;  %v3363_v34 = vld [vmem:[#allocation61_spill] sm:$0xff]  ;;  %v3364_v2 = vld [vmem:[#allocation27_spill] sm:$0xff] }
  0x76   : > { %v823_v4 = vadd.f32 %v815_v12, %v743_v17  ;;  %v843_v0 = vadd.f32 %v835_v62, %v763_v60  ;;  %v929_v32 = vmul.f32 %v3305_v56, %v3306_v16  ;;  %v949_v24 = vmul.f32 %v3361_v26, %v1946_v28  ;;  %v3366_v23 = vld [vmem:[#allocation64_spill] sm:$0xff] }
  0x77   : > { %v863_v8 = vadd.f32 %v855_v58, %v783_v41  ;;  %v897_v46 = vadd.f32 %v889_v39, %v803_v54  ;;  %v969_v45 = vmul.f32 %v3363_v34, %v3362_v49  ;;  %v989_v15 = vmul.f32 %v3365_v35, %v3364_v2  ;;  %v2276_v60 = vld [vmem:[#allocation2 + $0x85] sm:$0xff]  ;;  %v3368_v54 = vld [vmem:[#allocation66_spill] sm:$0xff] }
  0x78   : > { %v917_v63 = vadd.f32 %v909_v37, %v823_v4  ;;  %v937_v61 = vadd.f32 %v929_v32, %v843_v0  ;;  %v1009_v12 = vmul.f32 %v3366_v23, %v2260_v13  ;;  %3367 = vst [vmem:[#allocation24_spill] sm:$0xff] %v2276_v60  ;;  %v1043_v17 = vmul.f32 %v1968_v47, %v1978_v50 }
  0x79   : > { %v957_v62 = vadd.f32 %v949_v24, %v863_v8  ;;  %v977_v26 = vadd.f32 %v969_v45, %v897_v46  ;;  %v1063_v41 = vmul.f32 %v3368_v54, %v1980_v27  ;;  %v1083_v58 = vmul.f32 %v1991_v42, %v3311_v19  ;;  %v3369_v46 = vld [vmem:[#allocation74_spill] sm:$0xff]  ;;  %v2292_v54 = vld [vmem:[#allocation2 + $0x86] sm:$0xff] }
  0x7a   : > { %v997_v39 = vadd.f32 %v989_v15, %v917_v63  ;;  %v1017_v35 = vadd.f32 %v1009_v12, %v937_v61  ;;  %v1103_v37 = vmul.f32 %v3312_v14, %v3313_v5  ;;  %v1123_v4 = vmul.f32 %v3314_v57, %v2005_v55  ;;  %3370 = vst [vmem:[#allocation21_spill] sm:$0xff] %v2292_v54  ;;  %v3371_v61 = vld [vmem:[#allocation75_spill] sm:$0xff]  ;;  %v3372_v63 = vld [vmem:[#allocation80_spill] sm:$0xff]  ;;  %v3373_v12 = vld [vmem:[#allocation78_spill] sm:$0xff] }
  0x7b   : > { %v1051_v0 = vadd.f32 %v1043_v17, %v957_v62  ;;  %v1071_v32 = vadd.f32 %v1063_v41, %v977_v26  ;;  %v1143_v50 = vmul.f32 %v3315_v48, %v2165_v31  ;;  %v1163_v24 = vmul.f32 %v3369_v46, %v2276_v60  ;;  %v3374_v17 = vld [vmem:[#allocation81_spill] sm:$0xff]  ;;  %v3375_v26 = vld [vmem:[#allocation79_spill] sm:$0xff] }
  0x7c   : > { %v1091_v8 = vadd.f32 %v1083_v58, %v997_v39  ;;  %v1111_v45 = vadd.f32 %v1103_v37, %v1017_v35  ;;  %v1197_v15 = vmul.f32 %v3371_v61, %v2021_v53  ;;  %v1217_v14 = vmul.f32 %v3373_v12, %v3372_v63  ;;  %v3376_v41 = vld [vmem:[#allocation83_spill] sm:$0xff]  ;;  %v3377_v35 = vld [vmem:[#allocation84_spill] sm:$0xff]  ;;  %v3379_v37 = vld [vmem:[#allocation85_spill] sm:$0xff] }
  0x7d   : > { %v1131_v42 = vadd.f32 %v1123_v4, %v1051_v0  ;;  %v1151_v57 = vadd.f32 %v1143_v50, %v1071_v32  ;;  %v1237_v62 = vmul.f32 %v3375_v26, %v3374_v17  ;;  %v1257_v48 = vmul.f32 %v3376_v41, %v2049_v59  ;;  %v3378_v39 = vld [vmem:[#allocation36_spill] sm:$0xff]  ;;  %v2306_v53 = vld [vmem:[#allocation2 + $0x90] sm:$0xff]  ;;  %v3383_v50 = vld [vmem:[#allocation6_spill] sm:$0xff] }
  0x7e   : > { %v1171_v31 = vadd.f32 %v1163_v24, %v1091_v8  ;;  %v1205_v46 = vadd.f32 %v1197_v15, %v1111_v45  ;;  %v1277_v58 = vmul.f32 %v3377_v35, %v3319_v3  ;;  %v1297_v60 = vmul.f32 %v3379_v37, %v3378_v39  ;;  %3380 = vst [vmem:[#allocation18_spill] sm:$0xff] %v2306_v53  ;;  %v3381_v4 = vld [vmem:[#allocation76_spill] sm:$0xff]  ;;  %v3384_v24 = vld [vmem:[#allocation41_spill] sm:$0xff]  ;;  %v3385_v8 = vld [vmem:[#allocation7_spill] sm:$0xff] }
  0x7f   : > { %v1225_v61 = vadd.f32 %v1217_v14, %v1131_v42  ;;  %v1245_v12 = vadd.f32 %v1237_v62, %v1151_v57  ;;  %v1317_v0 = vmul.f32 %v3381_v4, %v2292_v54  ;;  %v3382_v32 = vld [vmem:[#allocation40_spill] sm:$0xff]  ;;  %v318_v45 = vmul.f32 %v3385_v8, %v3384_v24  ;;  %v3386_v15 = vld [vmem:[#allocation47_spill] sm:$0xff]  ;;  %v3388_v39 = vld [vmem:[#allocation50_spill] sm:$0xff] }
  0x80   : > { %v306_v26 = vmul.f32 %v3383_v50, %v3382_v32  ;;  %v1265_v17 = vadd.f32 %v1257_v48, %v1171_v31  ;;  %v1285_v41 = vadd.f32 %v1277_v58, %v1205_v46  ;;  %v3387_v35 = vld [vmem:[#allocation8_spill] sm:$0xff]  ;;  %v3389_v63 = vld [vmem:[#allocation9_spill] sm:$0xff]  ;;  %v3390_v57 = vld [vmem:[#allocation86_spill] sm:$0xff] }
  0x81   : > { %v330_v3 = vmul.f32 %v3387_v35, %v3386_v15  ;;  %v1305_v59 = vadd.f32 %v1297_v60, %v1225_v61  ;;  %v1325_v37 = vadd.f32 %v1317_v0, %v1245_v12  ;;  %v342_v42 = vmul.f32 %v3389_v63, %v3388_v39  ;;  %v3391_v14 = vld [vmem:[#allocation13_spill] sm:$0xff]  ;;  %v3392_v4 = vld [vmem:[#allocation4_spill] sm:$0xff]  ;;  %v3393_v54 = vld [vmem:[#allocation14_spill] sm:$0xff] }
  0x82   : > { %v354_v62 = vmul.f32 %v3391_v14, %v3390_v57  ;;  %v374_v55 = vmul.f32 %v3393_v54, %v3392_v4  ;;  %v3394_v31 = vld [vmem:[#allocation15_spill] sm:$0xff]  ;;  %v3395_v46 = vld [vmem:[#allocation53_spill] sm:$0xff]  ;;  %v3396_v58 = vld [vmem:[#allocation16_spill] sm:$0xff]  ;;  %v468_v14 = vmul.f32 %v3332_v9, %v3334_v44 }
  0x83   : > { %v394_v48 = vmul.f32 %v3394_v31, %v2306_v53  ;;  %v428_v32 = vmul.f32 %v3396_v58, %v3395_v46  ;;  %v3397_v8 = vld [vmem:[#allocation19_spill] sm:$0xff]  ;;  %v2328_v60 = vld [vmem:[#allocation2 + $0x91] sm:$0xff]  ;;  %v1333_v61 = vadd.f32 %v1325_v37, %v1265_v17  ;;  %v1341_v12 = vadd.f32 %v1305_v59, %v1285_v41 }
  0x84   : > { %v448_v35 = vmul.f32 %v3397_v8, %v3275_v11  ;;  %v362_v0 = vadd.f32 %v354_v62, %v306_v26  ;;  %v382_v63 = vadd.f32 %v374_v55, %v318_v45  ;;  %v488_v31 = vmul.f32 %v3335_v29, %v3336_v18  ;;  %v3398_v8 = vld [vmem:[#allocation5_spill] sm:$0xff]  ;;  %v3400_v41 = vld [vmem:[#allocation26_spill] sm:$0xff] }
  0x85   : > { %v402_v57 = vadd.f32 %v394_v48, %v330_v3  ;;  %v436_v54 = vadd.f32 %v428_v32, %v342_v42  ;;  %v1349_v53 = vadd.f32 %v1341_v12, %v1333_v61  ;;  %v508_v46 = vmul.f32 %v3337_v20, %v3338_v52  ;;  %v3399_v58 = vld [vmem:[#allocation25_spill] sm:$0xff]  ;;  %v3403_v48 = vld [vmem:[#allocation30_spill] sm:$0xff] }
  0x86   : > { %v456_v4 = vadd.f32 %v448_v35, %v362_v0  ;;  %v528_v17 = vmul.f32 %v3399_v58, %v3398_v8  ;;  %v476_v59 = vadd.f32 %v468_v14, %v382_v63  ;;  %v548_v37 = vmul.f32 %v3400_v41, %v2328_v60  ;;  %v2340_v55 = vld [vmem:[#allocation2 + $0x92] sm:$0xff]  ;;  %v3404_v63 = vld [vmem:[#allocation31_spill] sm:$0xff] }
  0x87   : > { %v496_v26 = vadd.f32 %v488_v31, %v402_v57  ;;  %3401 = vst [vmem:[#allocation48_spill] sm:$0xff] %v2340_v55  ;;  %v3402_v3 = vld [vmem:[#allocation29_spill] sm:$0xff]  ;;  %v1364_v42 = vadd.f32 %v2100_v1, %v1349_v53  ;;  %v516_v35 = vadd.f32 %v508_v46, %v436_v54  ;;  %v602_v32 = vmul.f32 %v3403_v48, %v3343_v40  ;;  %v3405_v0 = vld [vmem:[#allocation42_spill] sm:$0xff] }
  0x88   : > { %v582_v45 = vmul.f32 %v3402_v3, %v1896_v30  ;;  %v536_v62 = vadd.f32 %v528_v17, %v456_v4  ;;  %v556_v61 = vadd.f32 %v548_v37, %v476_v59  ;;  %v622_v57 = vmul.f32 %v3404_v63, %v3345_v10  ;;  %v3406_v41 = vld [vmem:[#allocation33_spill] sm:$0xff]  ;;  %v3407_v3 = vld [vmem:[#allocation11_spill] sm:$0xff]  ;;  %v3408_v53 = vld [vmem:[#allocation34_spill] sm:$0xff] }
  0x89   : > { %v642_v14 = vmul.f32 %v3346_v51, %v3347_v25  ;;  %1372 = vst [vmem:[%s2119_s11 + $0x10] sm:$0xff] %v1364_v42  ;;  %v610_v31 = vadd.f32 %v602_v32, %v516_v35  ;;  %v662_v30 = vmul.f32 %v3406_v41, %v3405_v0  ;;  %v682_v54 = vmul.f32 %v3408_v53, %v3407_v3  ;;  %v3409_v4 = vld [vmem:[#allocation35_spill] sm:$0xff]  ;;  %v3411_v37 = vld [vmem:[#allocation38_spill] sm:$0xff] }
  0x8a   : > { %v590_v12 = vadd.f32 %v582_v45, %v496_v26  ;;  %v702_v46 = vmul.f32 %v3409_v4, %v2340_v55  ;;  %v630_v17 = vadd.f32 %v622_v57, %v536_v62  ;;  %v3410_v26 = vld [vmem:[#allocation3_spill] sm:$0xff]  ;;  %v776_v35 = vmul.f32 %v3294_v36, %v3297_v22  ;;  %v3414_v57 = vld [vmem:[#allocation46_spill] sm:$0xff]  ;;  %v3415_v4 = vld [vmem:[#allocation17_spill] sm:$0xff] }
  0x8b   : > { %v650_v59 = vadd.f32 %v642_v14, %v556_v61  ;;  %v736_v45 = vmul.f32 %v3411_v37, %v3410_v26  ;;  %v3412_v63 = vld [vmem:[#allocation39_spill] sm:$0xff]  ;;  %v690_v42 = vadd.f32 %v682_v54, %v610_v31  ;;  %v796_v32 = vmul.f32 %v3296_v7, %v3355_v21  ;;  %v3413_v61 = vld [vmem:[#allocation12_spill] sm:$0xff]  ;;  %v2372_v31 = vld [vmem:[#allocation2 + $0x94] sm:$0xff] }
  0x8c   : > { %v756_v1 = vmul.f32 %v3412_v63, %v3295_v33  ;;  %v670_v51 = vadd.f32 %v662_v30, %v590_v12  ;;  %v710_v53 = vadd.f32 %v702_v46, %v630_v17  ;;  %v816_v62 = vmul.f32 %v3356_v6, %v3301_v43  ;;  %v3416_v33 = vld [vmem:[#allocation55_spill] sm:$0xff]  ;;  %3417 = vst [vmem:[#allocation22_spill] sm:$0xff] %v2372_v31  ;;  %v3418_v22 = vld [vmem:[#allocation56_spill] sm:$0xff]  ;;  %v3419_v46 = vld [vmem:[#allocation58_spill] sm:$0xff] }
  0x8d   : > { %v744_v41 = vadd.f32 %v736_v45, %v650_v59  ;;  %v836_v14 = vmul.f32 %v3414_v57, %v3413_v61  ;;  %v784_v37 = vadd.f32 %v776_v35, %v690_v42  ;;  %v856_v12 = vmul.f32 %v3416_v33, %v3415_v4  ;;  %v2388_v61 = vld [vmem:[#allocation2 + $0x95] sm:$0xff] }
  0x8e   : > { %v764_v26 = vadd.f32 %v756_v1, %v670_v51  ;;  %v890_v30 = vmul.f32 %v3418_v22, %v1923_v38  ;;  %v804_v54 = vadd.f32 %v796_v32, %v710_v53  ;;  %v910_v17 = vmul.f32 %v3419_v46, %v3306_v16  ;;  %v3420_v1 = vld [vmem:[#allocation60_spill] sm:$0xff]  ;;  %v3421_v38 = vld [vmem:[#allocation63_spill] sm:$0xff]  ;;  %3422 = vst [vmem:[#allocation51_spill] sm:$0xff] %v2388_v61 }
  0x8f   : > { %v824_v21 = vadd.f32 %v816_v62, %v744_v41  ;;  %v930_v43 = vmul.f32 %v3305_v56, %v1946_v28  ;;  %v864_v45 = vadd.f32 %v856_v12, %v784_v37  ;;  %v950_v51 = vmul.f32 %v3420_v1, %v3362_v49 }
  0x90   : > { %v844_v59 = vadd.f32 %v836_v14, %v764_v26  ;;  %v970_v4 = vmul.f32 %v3363_v34, %v3364_v2  ;;  %v898_v42 = vadd.f32 %v890_v30, %v804_v54  ;;  %v990_v53 = vmul.f32 %v3421_v38, %v2260_v13  ;;  %v3423_v14 = vld [vmem:[#allocation66_spill] sm:$0xff]  ;;  %v3424_v30 = vld [vmem:[#allocation69_spill] sm:$0xff] }
  0x91   : > { %v918_v35 = vadd.f32 %v910_v17, %v824_v21  ;;  %v1010_v41 = vmul.f32 %v3366_v23, %v2372_v31  ;;  %v958_v62 = vadd.f32 %v950_v51, %v864_v45  ;;  %v1044_v37 = vmul.f32 %v1968_v47, %v1980_v27  ;;  %v3425_v21 = vld [vmem:[#allocation73_spill] sm:$0xff]  ;;  %v3426_v17 = vld [vmem:[#allocation70_spill] sm:$0xff]  ;;  %v3429_v51 = vld [vmem:[#allocation24_spill] sm:$0xff] }
  0x92   : > { %v938_v32 = vadd.f32 %v930_v43, %v844_v59  ;;  %v1064_v26 = vmul.f32 %v3423_v14, %v3311_v19  ;;  %v978_v12 = vadd.f32 %v970_v4, %v898_v42  ;;  %v1084_v54 = vmul.f32 %v3424_v30, %v3313_v5  ;;  %v3427_v43 = vld [vmem:[#allocation28_spill] sm:$0xff]  ;;  %v3428_v59 = vld [vmem:[#allocation71_spill] sm:$0xff]  ;;  %v3431_v14 = vld [vmem:[#allocation74_spill] sm:$0xff] }
  0x93   : > { %v998_v34 = vadd.f32 %v990_v53, %v918_v35  ;;  %v1104_v38 = vmul.f32 %v3426_v17, %v3425_v21  ;;  %v1052_v23 = vadd.f32 %v1044_v37, %v958_v62  ;;  %v1124_v45 = vmul.f32 %v3428_v59, %v3427_v43  ;;  %v3430_v31 = vld [vmem:[#allocation72_spill] sm:$0xff]  ;;  %v2404_v42 = vld [vmem:[#allocation2 + $0x96] sm:$0xff]  ;;  %v3433_v53 = vld [vmem:[#allocation75_spill] sm:$0xff] }
  0x94   : > { %v1018_v13 = vadd.f32 %v1010_v41, %v938_v32  ;;  %v1144_v1 = vmul.f32 %v3430_v31, %v3429_v51  ;;  %v1072_v27 = vadd.f32 %v1064_v26, %v978_v12  ;;  %v1164_v4 = vmul.f32 %v3431_v14, %v2388_v61  ;;  %v3432_v35 = vld [vmem:[#allocation80_spill] sm:$0xff]  ;;  %v3434_v41 = vld [vmem:[#allocation81_spill] sm:$0xff]  ;;  %v3435_v32 = vld [vmem:[#allocation78_spill] sm:$0xff] }
  0x95   : > { %v1092_v47 = vadd.f32 %v1084_v54, %v998_v34  ;;  %v1198_v30 = vmul.f32 %v3433_v53, %v3432_v35  ;;  %v1132_v17 = vadd.f32 %v1124_v45, %v1052_v23  ;;  %v1218_v62 = vmul.f32 %v3435_v32, %v3434_v41  ;;  %v3436_v37 = vld [vmem:[#allocation82_spill] sm:$0xff]  ;;  %v3437_v59 = vld [vmem:[#allocation79_spill] sm:$0xff]  ;;  %v3438_v26 = vld [vmem:[#allocation77_spill] sm:$0xff] }
  0x96   : > { %v1112_v5 = vadd.f32 %v1104_v38, %v1018_v13  ;;  %v1238_v43 = vmul.f32 %v3437_v59, %v3436_v37  ;;  %v1152_v21 = vadd.f32 %v1144_v1, %v1072_v27  ;;  %v3439_v34 = vld [vmem:[#allocation83_spill] sm:$0xff]  ;;  %v3440_v54 = vld [vmem:[#allocation36_spill] sm:$0xff]  ;;  %v3443_v13 = vld [vmem:[#allocation21_spill] sm:$0xff] }
  0x97   : > { %v1172_v31 = vadd.f32 %v1164_v4, %v1092_v47  ;;  %v1258_v12 = vmul.f32 %v3439_v34, %v3438_v26  ;;  %v3441_v14 = vld [vmem:[#allocation84_spill] sm:$0xff]  ;;  %v2416_v51 = vld [vmem:[#allocation2 + $0xa0] sm:$0xff]  ;;  %v1226_v35 = vadd.f32 %v1218_v62, %v1132_v17  ;;  %v3444_v23 = vld [vmem:[#allocation85_spill] sm:$0xff]  ;;  %v307_v47 = vmul.f32 %v3383_v50, %v3384_v24 }
  0x98   : > { %v1278_v61 = vmul.f32 %v3441_v14, %v3440_v54  ;;  %3442 = vst [vmem:[#allocation23_spill] sm:$0xff] %v2416_v51  ;;  %v1206_v19 = vadd.f32 %v1198_v30, %v1112_v5  ;;  %v1298_v38 = vmul.f32 %v3444_v23, %v3443_v13  ;;  %v3445_v45 = vld [vmem:[#allocation76_spill] sm:$0xff]  ;;  %v1246_v53 = vadd.f32 %v1238_v43, %v1152_v21  ;;  %v3446_v1 = vld [vmem:[#allocation7_spill] sm:$0xff]  ;;  %v3448_v30 = vld [vmem:[#allocation86_spill] sm:$0xff] }
  0x99   : > { %v1318_v32 = vmul.f32 %v3445_v45, %v2404_v42  ;;  %v1266_v59 = vadd.f32 %v1258_v12, %v1172_v31  ;;  %v319_v27 = vmul.f32 %v3446_v1, %v3386_v15  ;;  %v3447_v34 = vld [vmem:[#allocation8_spill] sm:$0xff]  ;;  %v3449_v17 = vld [vmem:[#allocation9_spill] sm:$0xff]  ;;  %v3452_v21 = vld [vmem:[#allocation18_spill] sm:$0xff] }
  0x9a   : > { %v1286_v4 = vadd.f32 %v1278_v61, %v1206_v19  ;;  %v1306_v14 = vadd.f32 %v1298_v38, %v1226_v35  ;;  %v331_v5 = vmul.f32 %v3447_v34, %v3388_v39  ;;  %v343_v62 = vmul.f32 %v3449_v17, %v3448_v30  ;;  %v3450_v13 = vld [vmem:[#allocation4_spill] sm:$0xff]  ;;  %v3451_v54 = vld [vmem:[#allocation13_spill] sm:$0xff]  ;;  %v3453_v31 = vld [vmem:[#allocation14_spill] sm:$0xff] }
  0x9b   : > { %v1326_v23 = vadd.f32 %v1318_v32, %v1246_v53  ;;  %v355_v45 = vmul.f32 %v3451_v54, %v3450_v13  ;;  %v375_v43 = vmul.f32 %v3453_v31, %v3452_v21  ;;  %v3454_v24 = vld [vmem:[#allocation15_spill] sm:$0xff]  ;;  %v3455_v19 = vld [vmem:[#allocation16_spill] sm:$0xff]  ;;  %v469_v53 = vmul.f32 %v3332_v9, %v3336_v18  ;;  %v3457_v18 = vld [vmem:[#allocation26_spill] sm:$0xff] }
  0x9c   : > { %v395_v12 = vmul.f32 %v3454_v24, %v2416_v51  ;;  %v1342_v50 = vadd.f32 %v1306_v14, %v1286_v4  ;;  %v2436_v15 = vld [vmem:[#allocation2 + $0xa1] sm:$0xff]  ;;  %v429_v61 = vmul.f32 %v3455_v19, %v3275_v11  ;;  %v489_v24 = vmul.f32 %v3335_v29, %v3338_v52 }
  0x9d   : > { %v3456_v39 = vld [vmem:[#allocation19_spill] sm:$0xff]  ;;  %v1334_v32 = vadd.f32 %v1326_v23, %v1266_v59  ;;  %v363_v38 = vadd.f32 %v355_v45, %v307_v47  ;;  %v383_v54 = vadd.f32 %v375_v43, %v319_v27  ;;  %v509_v14 = vmul.f32 %v3337_v20, %v3398_v8  ;;  %v3459_v27 = vld [vmem:[#allocation29_spill] sm:$0xff] }
  0x9e   : > { %v449_v35 = vmul.f32 %v3456_v39, %v3334_v44  ;;  %v403_v17 = vadd.f32 %v395_v12, %v331_v5  ;;  %v437_v31 = vadd.f32 %v429_v61, %v343_v62  ;;  %v529_v11 = vmul.f32 %v3399_v58, %v2328_v60  ;;  %v2452_v47 = vld [vmem:[#allocation2 + $0xa2] sm:$0xff] }
  0x9f   : > { %v1350_v4 = vadd.f32 %v1342_v50, %v1334_v32  ;;  %v477_v44 = vadd.f32 %v469_v53, %v383_v54  ;;  %v549_v59 = vmul.f32 %v3457_v18, %v2436_v15  ;;  %3458 = vst [vmem:[#allocation20_spill] sm:$0xff] %v2452_v47  ;;  %v583_v5 = vmul.f32 %v3459_v27, %v3343_v40  ;;  %v3460_v43 = vld [vmem:[#allocation87_spill] sm:$0xff] }
  0xa0   : > { %v457_v19 = vadd.f32 %v449_v35, %v363_v38  ;;  %v497_v23 = vadd.f32 %v489_v24, %v403_v17  ;;  %v517_v45 = vadd.f32 %v509_v14, %v437_v31  ;;  %v603_v62 = vmul.f32 %v3403_v48, %v3345_v10  ;;  %v3461_v35 = vld [vmem:[#allocation31_spill] sm:$0xff]  ;;  %v3462_v17 = vld [vmem:[#allocation32_spill] sm:$0xff]  ;;  %v3463_v24 = vld [vmem:[#allocation33_spill] sm:$0xff] }
  0xa1   : > { %v1365_v12 = vadd.f32 %v3460_v43, %v1350_v4  ;;  %v557_v50 = vadd.f32 %v549_v59, %v477_v44  ;;  %v623_v54 = vmul.f32 %v3461_v35, %v3347_v25  ;;  %v643_v31 = vmul.f32 %v3462_v17, %v3405_v0  ;;  %v3464_v14 = vld [vmem:[#allocation34_spill] sm:$0xff]  ;;  %v3465_v4 = vld [vmem:[#allocation35_spill] sm:$0xff] }
  0xa2   : > { %v537_v61 = vadd.f32 %v529_v11, %v457_v19  ;;  %v591_v53 = vadd.f32 %v583_v5, %v497_v23  ;;  %v611_v32 = vadd.f32 %v603_v62, %v517_v45  ;;  %v663_v38 = vmul.f32 %v3463_v24, %v3407_v3  ;;  %v2470_v11 = vld [vmem:[#allocation2 + $0xa3] sm:$0xff]  ;;  %v3467_v25 = vld [vmem:[#allocation38_spill] sm:$0xff] }
  0xa3   : > { %1373 = vst [vmem:[%s2119_s11 + $0x18] sm:$0xff] %v1365_v12  ;;  %v683_v10 = vmul.f32 %v3464_v14, %v2340_v55  ;;  %v703_v19 = vmul.f32 %v3465_v4, %v2452_v47  ;;  %3466 = vst [vmem:[#allocation54_spill] sm:$0xff] %v2470_v11  ;;  %v1531_v44 = vld [vmem:[#allocation2 + $0x43] sm:$0xff]  ;;  %v651_v23 = vadd.f32 %v643_v31, %v557_v50  ;;  %v2473_v5 = vld [vmem:[#allocation2 + $0x53] sm:$0xff] }
  0xa4   : > { %v631_v40 = vadd.f32 %v623_v54, %v537_v61  ;;  %v737_v59 = vmul.f32 %v1531_v44, %v3467_v25  ;;  %v671_v45 = vadd.f32 %v663_v38, %v591_v53  ;;  %v757_v62 = vmul.f32 %v2473_v5, %v3412_v63  ;;  %v2477_v12 = vld [vmem:[#allocation2 + $0x63] sm:$0xff]  ;;  %v2481_v4 = vld [vmem:[#allocation2 + $0x73] sm:$0xff] }
  0xa5   : > { %3468 = vst [vmem:[#allocation49_spill] sm:$0xff] %v2477_v12  ;;  %v777_v61 = vmul.f32 %v2477_v12, %v3294_v36  ;;  %v691_v54 = vadd.f32 %v683_v10, %v611_v32  ;;  %3469 = vst [vmem:[#allocation52_spill] sm:$0xff] %v2481_v4  ;;  %v797_v47 = vmul.f32 %v2481_v4, %v3296_v7  ;;  %v2485_v44 = vld [vmem:[#allocation2 + $0x83] sm:$0xff]  ;;  %v2489_v38 = vld [vmem:[#allocation2 + $0x93] sm:$0xff] }
  0xa6   : > { %v711_v14 = vadd.f32 %v703_v19, %v631_v40  ;;  %3470 = vst [vmem:[#allocation37_spill] sm:$0xff] %v2485_v44  ;;  %v817_v50 = vmul.f32 %v2485_v44, %v3356_v6  ;;  %v745_v53 = vadd.f32 %v737_v59, %v651_v23  ;;  %v765_v31 = vadd.f32 %v757_v62, %v671_v45  ;;  %v2495_v19 = vld [vmem:[#allocation2 + $0xa4] sm:$0xff] }
  0xa7   : > { %3471 = vst [vmem:[#allocation10_spill] sm:$0xff] %v2489_v38  ;;  %v837_v63 = vmul.f32 %v2489_v38, %v3414_v57  ;;  %v857_v32 = vmul.f32 %v3416_v33, %v2470_v11  ;;  %v785_v40 = vadd.f32 %v777_v61, %v691_v54  ;;  %3472 = vst [vmem:[#allocation62_spill] sm:$0xff] %v2495_v19  ;;  %v3473_v62 = vld [vmem:[#allocation60_spill] sm:$0xff]  ;;  %v3474_v61 = vld [vmem:[#allocation57_spill] sm:$0xff] }
  0xa8   : > { %v805_v10 = vadd.f32 %v797_v47, %v711_v14  ;;  %v891_v7 = vmul.f32 %v3418_v22, %v3306_v16  ;;  %v911_v6 = vmul.f32 %v3419_v46, %v1946_v28  ;;  %v825_v59 = vadd.f32 %v817_v50, %v745_v53  ;;  %v3475_v47 = vld [vmem:[#allocation61_spill] sm:$0xff]  ;;  %v3476_v54 = vld [vmem:[#allocation22_spill] sm:$0xff]  ;;  %v3477_v11 = vld [vmem:[#allocation63_spill] sm:$0xff] }
  0xa9   : > { %v845_v23 = vadd.f32 %v837_v63, %v765_v31  ;;  %v931_v45 = vmul.f32 %v3305_v56, %v3362_v49  ;;  %v951_v57 = vmul.f32 %v3473_v62, %v3364_v2  ;;  %v865_v38 = vadd.f32 %v857_v32, %v785_v40  ;;  %v3478_v28 = vld [vmem:[#allocation64_spill] sm:$0xff]  ;;  %v3480_v53 = vld [vmem:[#allocation67_spill] sm:$0xff]  ;;  %v3481_v49 = vld [vmem:[#allocation65_spill] sm:$0xff] }
  0xaa   : > { %v899_v33 = vadd.f32 %v891_v7, %v805_v10  ;;  %v971_v14 = vmul.f32 %v3475_v47, %v3474_v61  ;;  %v991_v44 = vmul.f32 %v3477_v11, %v3476_v54  ;;  %v919_v16 = vadd.f32 %v911_v6, %v825_v59  ;;  %v2511_v63 = vld [vmem:[#allocation2 + $0xa5] sm:$0xff]  ;;  %v3483_v7 = vld [vmem:[#allocation66_spill] sm:$0xff]  ;;  %v3484_v10 = vld [vmem:[#allocation73_spill] sm:$0xff] }
  0xab   : > { %v939_v22 = vadd.f32 %v931_v45, %v845_v23  ;;  %v1011_v50 = vmul.f32 %v3478_v28, %v2495_v19  ;;  %3479 = vst [vmem:[#allocation40_spill] sm:$0xff] %v2511_v63  ;;  %v1045_v31 = vmul.f32 %v3481_v49, %v3480_v53  ;;  %v959_v56 = vadd.f32 %v951_v57, %v865_v38  ;;  %v3482_v32 = vld [vmem:[#allocation68_spill] sm:$0xff]  ;;  %v3485_v47 = vld [vmem:[#allocation69_spill] sm:$0xff]  ;;  %v3487_v59 = vld [vmem:[#allocation70_spill] sm:$0xff] }
  0xac   : > { %v979_v62 = vadd.f32 %v971_v14, %v899_v33  ;;  %v1065_v40 = vmul.f32 %v3483_v7, %v3482_v32  ;;  %v1085_v61 = vmul.f32 %v3485_v47, %v3484_v10  ;;  %v999_v2 = vadd.f32 %v991_v44, %v919_v16  ;;  %v3486_v6 = vld [vmem:[#allocation28_spill] sm:$0xff]  ;;  %v3489_v28 = vld [vmem:[#allocation71_spill] sm:$0xff]  ;;  %v3492_v33 = vld [vmem:[#allocation74_spill] sm:$0xff] }
  0xad   : > { %v1019_v11 = vadd.f32 %v1011_v50, %v939_v22  ;;  %v1105_v23 = vmul.f32 %v3487_v59, %v3486_v6  ;;  %v3488_v45 = vld [vmem:[#allocation24_spill] sm:$0xff]  ;;  %v1053_v54 = vadd.f32 %v1045_v31, %v959_v56  ;;  %v3490_v4 = vld [vmem:[#allocation51_spill] sm:$0xff]  ;;  %v1165_v38 = vmul.f32 %v3492_v33, %v2511_v63  ;;  %v3495_v16 = vld [vmem:[#allocation78_spill] sm:$0xff] }
  0xae   : > { %v1125_v19 = vmul.f32 %v3489_v28, %v3488_v45  ;;  %v1073_v46 = vadd.f32 %v1065_v40, %v979_v62  ;;  %v3491_v53 = vld [vmem:[#allocation72_spill] sm:$0xff]  ;;  %v1093_v14 = vadd.f32 %v1085_v61, %v999_v2  ;;  %v3494_v22 = vld [vmem:[#allocation75_spill] sm:$0xff]  ;;  %v1219_v50 = vmul.f32 %v3495_v16, %v3436_v37  ;;  %v3499_v2 = vld [vmem:[#allocation21_spill] sm:$0xff] }
  0xaf   : > { %v1145_v57 = vmul.f32 %v3491_v53, %v3490_v4  ;;  %v1113_v32 = vadd.f32 %v1105_v23, %v1019_v11  ;;  %v2527_v7 = vld [vmem:[#allocation2 + $0xa6] sm:$0xff]  ;;  %v1199_v44 = vmul.f32 %v3494_v22, %v3434_v41  ;;  %v3501_v23 = vld [vmem:[#allocation85_spill] sm:$0xff] }
  0xb0   : > { %3493 = vst [vmem:[#allocation41_spill] sm:$0xff] %v2527_v7  ;;  %v1133_v10 = vadd.f32 %v1125_v19, %v1053_v54  ;;  %v3496_v56 = vld [vmem:[#allocation79_spill] sm:$0xff]  ;;  %v3497_v31 = vld [vmem:[#allocation36_spill] sm:$0xff]  ;;  %v1173_v4 = vadd.f32 %v1165_v38, %v1093_v14  ;;  %v1299_v63 = vmul.f32 %v3501_v23, %v2404_v42  ;;  %v3503_v54 = vld [vmem:[#allocation6_spill] sm:$0xff]  ;;  %v332_v14 = vmul.f32 %v3447_v34, %v3448_v30 }
  0xb1   : > { %v1153_v28 = vadd.f32 %v1145_v57, %v1073_v46  ;;  %v1239_v62 = vmul.f32 %v3496_v56, %v3438_v26  ;;  %v3498_v40 = vld [vmem:[#allocation83_spill] sm:$0xff]  ;;  %v1207_v33 = vadd.f32 %v1199_v44, %v1113_v32  ;;  %v3500_v11 = vld [vmem:[#allocation84_spill] sm:$0xff]  ;;  %v1537_v46 = vld [vmem:[#allocation2 + $0x50] sm:$0xff] }
  0xb2   : > { %v1259_v53 = vmul.f32 %v3498_v40, %v3497_v31  ;;  %v1279_v61 = vmul.f32 %v3500_v11, %v3499_v2  ;;  %v1227_v41 = vadd.f32 %v1219_v50, %v1133_v10  ;;  %v3502_v37 = vld [vmem:[#allocation76_spill] sm:$0xff]  ;;  %v308_v57 = vmul.f32 %v1537_v46, %v3503_v54  ;;  %v2544_v16 = vld [vmem:[#allocation2 + $0x60] sm:$0xff]  ;;  %v3505_v10 = vld [vmem:[#allocation13_spill] sm:$0xff] }
  0xb3   : > { %v1247_v22 = vadd.f32 %v1239_v62, %v1153_v28  ;;  %v1319_v19 = vmul.f32 %v3502_v37, %v2527_v7  ;;  %v320_v38 = vmul.f32 %v2544_v16, %v3446_v1  ;;  %v3504_v28 = vld [vmem:[#allocation9_spill] sm:$0xff]  ;;  %v356_v62 = vmul.f32 %v3505_v10, %v3452_v21  ;;  %v3506_v37 = vld [vmem:[#allocation14_spill] sm:$0xff]  ;;  %v3509_v1 = vld [vmem:[#allocation16_spill] sm:$0xff] }
  0xb4   : > { %v1267_v26 = vadd.f32 %v1259_v53, %v1173_v4  ;;  %v1287_v56 = vadd.f32 %v1279_v61, %v1207_v33  ;;  %v1307_v32 = vadd.f32 %v1299_v63, %v1227_v41  ;;  %v344_v50 = vmul.f32 %v3504_v28, %v3450_v13  ;;  %v2556_v53 = vld [vmem:[#allocation2] sm:$0xff]  ;;  %v1540_v46 = vld [vmem:[#allocation2 + $0x51] sm:$0xff] }
  0xb5   : > { %v1327_v44 = vadd.f32 %v1319_v19, %v1247_v22  ;;  %v376_v4 = vmul.f32 %v3506_v37, %v2416_v51  ;;  %3507 = vst [vmem:[#allocation47_spill] sm:$0xff] %v2556_v53  ;;  %v3508_v33 = vld [vmem:[#allocation15_spill] sm:$0xff]  ;;  %v430_v30 = vmul.f32 %v1540_v46, %v3509_v1  ;;  %v364_v10 = vadd.f32 %v356_v62, %v308_v57  ;;  %v2572_v46 = vld [vmem:[#allocation2 + $0xb1] sm:$0xff] }
  0xb6   : > { %v2560_v61 = vmul.f32 %v2556_v53, %v3508_v33  ;;  %v2563_v63 = vld [vmem:[#allocation2 + $0x61] sm:$0xff]  ;;  %v1343_v19 = vadd.f32 %v1307_v32, %v1287_v56  ;;  %v470_v37 = vmul.f32 %v3332_v9, %v3338_v52  ;;  %v490_v33 = vmul.f32 %v3335_v29, %v3398_v8 }
  0xb7   : > { %v450_v22 = vmul.f32 %v2563_v63, %v3456_v39  ;;  %v1335_v41 = vadd.f32 %v1327_v44, %v1267_v26  ;;  %v384_v51 = vadd.f32 %v376_v4, %v320_v38  ;;  %v438_v21 = vadd.f32 %v430_v30, %v344_v50  ;;  %v2580_v38 = vld [vmem:[#allocation2 + $0xb2] sm:$0xff]  ;;  %v2584_v62 = vld [vmem:[#allocation2 + $0x62] sm:$0xff] }
  0xb8   : > { %v404_v28 = vadd.f32 %v2560_v61, %v332_v14  ;;  %v510_v39 = vmul.f32 %v3337_v20, %v2328_v60  ;;  %v530_v56 = vmul.f32 %v3399_v58, %v2436_v15  ;;  %v550_v26 = vmul.f32 %v3457_v18, %v2572_v46  ;;  %3510 = vst [vmem:[#allocation50_spill] sm:$0xff] %v2580_v38  ;;  %v1542_v14 = vld [vmem:[#allocation2 + $0x52] sm:$0xff] }
  0xb9   : > { %v1351_v53 = vadd.f32 %v1343_v19, %v1335_v41  ;;  %v458_v1 = vadd.f32 %v450_v22, %v364_v10  ;;  %v478_v57 = vadd.f32 %v470_v37, %v384_v51  ;;  %v584_v32 = vmul.f32 %v1542_v14, %v3459_v27 }
  0xba   : > { %v498_v52 = vadd.f32 %v490_v33, %v404_v28  ;;  %v518_v50 = vadd.f32 %v510_v39, %v438_v21  ;;  %v604_v4 = vmul.f32 %v2584_v62, %v3403_v48  ;;  %v624_v28 = vmul.f32 %v3461_v35, %v3405_v0  ;;  %v3511_v21 = vld [vmem:[#allocation20_spill] sm:$0xff] }
  0xbb   : > { %v1366_v44 = vadd.f32 %v3460_v43, %v1351_v53  ;;  %v538_v10 = vadd.f32 %v530_v56, %v458_v1  ;;  %v558_v30 = vadd.f32 %v550_v26, %v478_v57  ;;  %v644_v37 = vmul.f32 %v3462_v17, %v3407_v3  ;;  %v3512_v1 = vld [vmem:[#allocation34_spill] sm:$0xff]  ;;  %v3513_v53 = vld [vmem:[#allocation35_spill] sm:$0xff] }
  0xbc   : > { %v592_v51 = vadd.f32 %v584_v32, %v498_v52  ;;  %v612_v22 = vadd.f32 %v604_v4, %v518_v50  ;;  %v664_v43 = vmul.f32 %v3463_v24, %v2340_v55  ;;  %v684_v39 = vmul.f32 %v3512_v1, %v3511_v21  ;;  %v2599_v56 = vld [vmem:[#allocation2 + $0xb3] sm:$0xff]  ;;  %v3515_v57 = vld [vmem:[#allocation39_spill] sm:$0xff]  ;;  %v3516_v32 = vld [vmem:[#allocation52_spill] sm:$0xff] }
  0xbd   : > { %1374 = vst [vmem:[%s2119_s11 + $0x20] sm:$0xff] %v1366_v44  ;;  %v704_v41 = vmul.f32 %v3513_v53, %v2580_v38  ;;  %v632_v19 = vadd.f32 %v624_v28, %v538_v10  ;;  %v652_v33 = vadd.f32 %v644_v37, %v558_v30  ;;  %3514 = vst [vmem:[#allocation53_spill] sm:$0xff] %v2599_v56  ;;  %v3517_v50 = vld [vmem:[#allocation44_spill] sm:$0xff]  ;;  %v3518_v4 = vld [vmem:[#allocation37_spill] sm:$0xff] }
  0xbe   : > { %v738_v0 = vmul.f32 %v2473_v5, %v3467_v25  ;;  %v758_v52 = vmul.f32 %v2477_v12, %v3515_v57  ;;  %v672_v26 = vadd.f32 %v664_v43, %v592_v51  ;;  %v692_v14 = vadd.f32 %v684_v39, %v612_v22  ;;  %v3519_v10 = vld [vmem:[#allocation45_spill] sm:$0xff]  ;;  %v3520_v30 = vld [vmem:[#allocation10_spill] sm:$0xff]  ;;  %v3523_v57 = vld [vmem:[#allocation55_spill] sm:$0xff] }
  0xbf   : > { %v778_v44 = vmul.f32 %v3516_v32, %v3294_v36  ;;  %v798_v1 = vmul.f32 %v3518_v4, %v3517_v50  ;;  %v712_v24 = vadd.f32 %v704_v41, %v632_v19  ;;  %v818_v28 = vmul.f32 %v3520_v30, %v3519_v10  ;;  %v3521_v37 = vld [vmem:[#allocation54_spill] sm:$0xff]  ;;  %v3525_v39 = vld [vmem:[#allocation56_spill] sm:$0xff]  ;;  %v3529_v10 = vld [vmem:[#allocation59_spill] sm:$0xff] }
  0xc0   : > { %v746_v53 = vadd.f32 %v738_v0, %v652_v33  ;;  %v3522_v38 = vld [vmem:[#allocation46_spill] sm:$0xff]  ;;  %v766_v5 = vadd.f32 %v758_v52, %v672_v26  ;;  %v858_v51 = vmul.f32 %v3523_v57, %v2599_v56  ;;  %v2618_v41 = vld [vmem:[#allocation2 + $0x64] sm:$0xff] }
  0xc1   : > { %v838_v21 = vmul.f32 %v3522_v38, %v3521_v37  ;;  %v786_v25 = vadd.f32 %v778_v44, %v692_v14  ;;  %v2615_v22 = vld [vmem:[#allocation2 + $0xb4] sm:$0xff]  ;;  %v806_v32 = vadd.f32 %v798_v1, %v712_v24  ;;  %3526 = vst [vmem:[#allocation25_spill] sm:$0xff] %v2618_v41  ;;  %v3528_v0 = vld [vmem:[#allocation27_spill] sm:$0xff]  ;;  %v3531_v44 = vld [vmem:[#allocation60_spill] sm:$0xff] }
  0xc2   : > { %3524 = vst [vmem:[#allocation5_spill] sm:$0xff] %v2615_v22  ;;  %v1544_v43 = vld [vmem:[#allocation2 + $0x54] sm:$0xff]  ;;  %v826_v50 = vadd.f32 %v818_v28, %v746_v53  ;;  %v932_v38 = vmul.f32 %v3529_v10, %v3528_v0  ;;  %v3535_v1 = vld [vmem:[#allocation63_spill] sm:$0xff]  ;;  %v3536_v28 = vld [vmem:[#allocation64_spill] sm:$0xff] }
  0xc3   : > { %v892_v36 = vmul.f32 %v1544_v43, %v3525_v39  ;;  %v3527_v19 = vld [vmem:[#allocation58_spill] sm:$0xff]  ;;  %v846_v52 = vadd.f32 %v838_v21, %v766_v5  ;;  %v866_v26 = vadd.f32 %v858_v51, %v786_v25  ;;  %v3530_v14 = vld [vmem:[#allocation57_spill] sm:$0xff]  ;;  %v1012_v39 = vmul.f32 %v3536_v28, %v2615_v22  ;;  %v2635_v5 = vld [vmem:[#allocation2 + $0x65] sm:$0xff] }
  0xc4   : > { %v912_v33 = vmul.f32 %v2618_v41, %v3527_v19  ;;  %v952_v57 = vmul.f32 %v3531_v44, %v3530_v14  ;;  %v3532_v56 = vld [vmem:[#allocation22_spill] sm:$0xff]  ;;  %v3533_v37 = vld [vmem:[#allocation61_spill] sm:$0xff] }
  0xc5   : > { %v972_v30 = vmul.f32 %v3533_v37, %v3532_v56  ;;  %v900_v4 = vadd.f32 %v892_v36, %v806_v32  ;;  %v3534_v24 = vld [vmem:[#allocation62_spill] sm:$0xff]  ;;  %v940_v19 = vadd.f32 %v932_v38, %v846_v52  ;;  %v3538_v52 = vld [vmem:[#allocation51_spill] sm:$0xff] }
  0xc6   : > { %v920_v43 = vadd.f32 %v912_v33, %v826_v50  ;;  %v992_v53 = vmul.f32 %v3535_v1, %v3534_v24  ;;  %v960_v41 = vadd.f32 %v952_v57, %v866_v26  ;;  %v2632_v12 = vld [vmem:[#allocation2 + $0xb5] sm:$0xff]  ;;  %v1086_v50 = vmul.f32 %v3485_v47, %v3486_v6  ;;  %v3539_v26 = vld [vmem:[#allocation71_spill] sm:$0xff]  ;;  %v3540_v1 = vld [vmem:[#allocation40_spill] sm:$0xff] }
  0xc7   : > { %v1546_v21 = vld [vmem:[#allocation2 + $0x55] sm:$0xff]  ;;  %v980_v36 = vadd.f32 %v972_v30, %v900_v4  ;;  %v1106_v33 = vmul.f32 %v3487_v59, %v3488_v45  ;;  %v1020_v38 = vadd.f32 %v1012_v39, %v940_v19  ;;  %v1126_v28 = vmul.f32 %v3539_v26, %v3538_v52  ;;  %v3544_v6 = vld [vmem:[#allocation75_spill] sm:$0xff] }
  0xc8   : > { %v1046_v25 = vmul.f32 %v1546_v21, %v3481_v49  ;;  %v3537_v51 = vld [vmem:[#allocation66_spill] sm:$0xff]  ;;  %v1000_v32 = vadd.f32 %v992_v53, %v920_v43  ;;  %v3541_v21 = vld [vmem:[#allocation72_spill] sm:$0xff] }
  0xc9   : > { %v1066_v0 = vmul.f32 %v2635_v5, %v3537_v51  ;;  %v1146_v49 = vmul.f32 %v3541_v21, %v3540_v1  ;;  %v3542_v51 = vld [vmem:[#allocation74_spill] sm:$0xff]  ;;  %v1114_v47 = vadd.f32 %v1106_v33, %v1020_v38  ;;  %v2652_v39 = vld [vmem:[#allocation2 + $0x66] sm:$0xff]  ;;  %v2667_v33 = vld [vmem:[%s2900_s1 + $0x30] ss:$0 sm:$0xff] }
  0xca   : > { %v1054_v57 = vadd.f32 %v1046_v25, %v960_v41  ;;  %v1094_v37 = vadd.f32 %v1086_v50, %v1000_v32  ;;  %v1166_v4 = vmul.f32 %v3542_v51, %v2632_v12  ;;  %v2649_v30 = vld [vmem:[#allocation2 + $0xb6] sm:$0xff]  ;;  %v3546_v25 = vld [vmem:[#allocation79_spill] sm:$0xff]  ;;  %v1260_v32 = vmul.f32 %v3498_v40, %v3499_v2  ;;  %3547 = vst [vmem:[#allocation11_spill] sm:$0xff] %v2667_v33 }
  0xcb   : > { %v1074_v22 = vadd.f32 %v1066_v0, %v980_v36  ;;  %3543 = vst [vmem:[#allocation42_spill] sm:$0xff] %v2649_v30  ;;  %v1548_v43 = vld [vmem:[#allocation2 + $0x56] sm:$0xff]  ;;  %v1240_v21 = vmul.f32 %v3546_v25, %v3497_v31  ;;  %v1280_v50 = vmul.f32 %v3500_v11, %v2404_v42 }
  0xcc   : > { %v1200_v53 = vmul.f32 %v1548_v43, %v3544_v6  ;;  %v1134_v59 = vadd.f32 %v1126_v28, %v1054_v57  ;;  %v3545_v41 = vld [vmem:[#allocation78_spill] sm:$0xff]  ;;  %v1174_v36 = vadd.f32 %v1166_v4, %v1094_v37  ;;  %v1300_v28 = vmul.f32 %v3501_v23, %v2527_v7  ;;  %v2673_v38 = vld [vmem:[#allocation2 + $0x70] sm:$0xff] }
  0xcd   : > { %v1220_v19 = vmul.f32 %v2652_v39, %v3545_v41  ;;  %v1154_v0 = vadd.f32 %v1146_v49, %v1074_v22  ;;  %v1320_v49 = vmul.f32 %v2667_v33, %v2649_v30  ;;  %v309_v22 = vmul.f32 %v2544_v16, %v3503_v54  ;;  %v3550_v23 = vld [vmem:[#allocation9_spill] sm:$0xff]  ;;  %v3551_v33 = vld [vmem:[#allocation23_spill] sm:$0xff]  ;;  %v3555_v30 = vld [vmem:[#allocation16_spill] sm:$0xff] }
  0xce   : > { %v1208_v51 = vadd.f32 %v1200_v53, %v1114_v47  ;;  %v1268_v37 = vadd.f32 %v1260_v32, %v1174_v36  ;;  %v3548_v47 = vld [vmem:[#allocation7_spill] sm:$0xff]  ;;  %v333_v53 = vmul.f32 %v3447_v34, %v3450_v13  ;;  %v3553_v36 = vld [vmem:[#allocation14_spill] sm:$0xff] }
  0xcf   : > { %v1228_v43 = vadd.f32 %v1220_v19, %v1134_v59  ;;  %v1248_v31 = vadd.f32 %v1240_v21, %v1154_v0  ;;  %v321_v59 = vmul.f32 %v2673_v38, %v3548_v47  ;;  %v3549_v19 = vld [vmem:[#allocation18_spill] sm:$0xff]  ;;  %v3552_v21 = vld [vmem:[#allocation13_spill] sm:$0xff]  ;;  %v3554_v32 = vld [vmem:[#allocation47_spill] sm:$0xff] }
  0xd0   : > { %v1288_v57 = vadd.f32 %v1280_v50, %v1208_v51  ;;  %v345_v11 = vmul.f32 %v3550_v23, %v3549_v19  ;;  %v357_v0 = vmul.f32 %v3552_v21, %v3551_v33  ;;  %v2685_v16 = vmul.f32 %v3554_v32, %v3553_v36  ;;  %v2687_v54 = vld [vmem:[#allocation2 + $0xc1] sm:$0xff]  ;;  %v2692_v13 = vld [vmem:[#allocation2 + $0x71] sm:$0xff] }
  0xd1   : > { %v1308_v4 = vadd.f32 %v1300_v28, %v1228_v43  ;;  %v1328_v7 = vadd.f32 %v1320_v49, %v1248_v31  ;;  %v431_v51 = vmul.f32 %v2563_v63, %v3555_v30  ;;  %v405_v43 = vadd.f32 %v2560_v61, %v333_v53  ;;  %v3556_v28 = vld [vmem:[#allocation19_spill] sm:$0xff] }
  0xd2   : > { %v451_v49 = vmul.f32 %v2692_v13, %v3556_v28  ;;  %v471_v31 = vmul.f32 %v3332_v9, %v3398_v8  ;;  %v365_v23 = vadd.f32 %v357_v0, %v309_v22  ;;  %v385_v36 = vadd.f32 %v2685_v16, %v321_v59  ;;  %v2709_v22 = vld [vmem:[#allocation2 + $0xc2] sm:$0xff]  ;;  %v2711_v59 = vld [vmem:[#allocation2 + $0x72] sm:$0xff] }
  0xd3   : > { %v1344_v50 = vadd.f32 %v1308_v4, %v1288_v57  ;;  %v1336_v21 = vadd.f32 %v1328_v7, %v1268_v37  ;;  %v439_v32 = vadd.f32 %v431_v51, %v345_v11  ;;  %v491_v33 = vmul.f32 %v3335_v29, %v2328_v60  ;;  %3557 = vst [vmem:[#allocation3_spill] sm:$0xff] %v2709_v22 }
  0xd4   : > { %v511_v63 = vmul.f32 %v3337_v20, %v2436_v15  ;;  %v531_v57 = vmul.f32 %v3399_v58, %v2572_v46  ;;  %v551_v4 = vmul.f32 %v3457_v18, %v2687_v54  ;;  %v459_v28 = vadd.f32 %v451_v49, %v365_v23  ;;  %3558 = vst [vmem:[#allocation12_spill] sm:$0xff] %v2711_v59  ;;  %v2720_v23 = vld [vmem:[%s2901_s2] ss:$0 sm:$0xff]  ;;  %v3560_v49 = vld [vmem:[#allocation20_spill] sm:$0xff] }
  0xd5   : > { %v1352_v53 = vadd.f32 %v1344_v50, %v1336_v21  ;;  %v479_v8 = vadd.f32 %v471_v31, %v385_v36  ;;  %v585_v7 = vmul.f32 %v2584_v62, %v3459_v27  ;;  %v499_v11 = vadd.f32 %v491_v33, %v405_v43  ;;  %3559 = vst [vmem:[#allocation17_spill] sm:$0xff] %v2720_v23  ;;  %v3561_v31 = vld [vmem:[#allocation33_spill] sm:$0xff]  ;;  %v3564_v27 = vld [vmem:[#allocation35_spill] sm:$0xff] }
  0xd6   : > { %v519_v37 = vadd.f32 %v511_v63, %v439_v32  ;;  %v605_v0 = vmul.f32 %v2711_v59, %v3403_v48  ;;  %v625_v51 = vmul.f32 %v3461_v35, %v3407_v3  ;;  %v539_v21 = vadd.f32 %v531_v57, %v459_v28  ;;  %v3562_v63 = vld [vmem:[#allocation50_spill] sm:$0xff]  ;;  %v3567_v57 = vld [vmem:[#allocation49_spill] sm:$0xff] }
  0xd7   : > { %v1367_v62 = vadd.f32 %v2720_v23, %v1352_v53  ;;  %v559_v33 = vadd.f32 %v551_v4, %v479_v8  ;;  %v645_v32 = vmul.f32 %v3462_v17, %v2340_v55  ;;  %v593_v50 = vadd.f32 %v585_v7, %v499_v11  ;;  %v3563_v48 = vld [vmem:[#allocation34_spill] sm:$0xff]  ;;  %v2732_v53 = vld [vmem:[#allocation2 + $0xc3] sm:$0xff]  ;;  %v3571_v17 = vld [vmem:[#allocation37_spill] sm:$0xff] }
  0xd8   : > { %v613_v43 = vadd.f32 %v605_v0, %v519_v37  ;;  %v665_v36 = vmul.f32 %v3561_v31, %v3560_v49  ;;  %v685_v3 = vmul.f32 %v3563_v48, %v3562_v63  ;;  %v633_v35 = vadd.f32 %v625_v51, %v539_v21  ;;  %3565 = vst [vmem:[#allocation80_spill] sm:$0xff] %v2732_v53  ;;  %v3566_v28 = vld [vmem:[#allocation38_spill] sm:$0xff]  ;;  %v3568_v11 = vld [vmem:[#allocation39_spill] sm:$0xff]  ;;  %v3569_v37 = vld [vmem:[#allocation52_spill] sm:$0xff] }
  0xd9   : > { %1375 = vst [vmem:[%s2119_s11 + $0x28] sm:$0xff] %v1367_v62  ;;  %v653_v59 = vadd.f32 %v645_v32, %v559_v33  ;;  %v705_v18 = vmul.f32 %v3564_v27, %v2709_v22  ;;  %v739_v4 = vmul.f32 %v3567_v57, %v3566_v28  ;;  %v759_v0 = vmul.f32 %v3569_v37, %v3568_v11  ;;  %v3570_v31 = vld [vmem:[#allocation43_spill] sm:$0xff]  ;;  %v3572_v51 = vld [vmem:[#allocation44_spill] sm:$0xff]  ;;  %v3573_v21 = vld [vmem:[#allocation10_spill] sm:$0xff] }
  0xda   : > { %v673_v8 = vadd.f32 %v665_v36, %v593_v50  ;;  %v693_v7 = vadd.f32 %v685_v3, %v613_v43  ;;  %v779_v49 = vmul.f32 %v3571_v17, %v3570_v31  ;;  %v799_v33 = vmul.f32 %v3573_v21, %v3572_v51  ;;  %v3574_v32 = vld [vmem:[#allocation54_spill] sm:$0xff]  ;;  %v3575_v27 = vld [vmem:[#allocation45_spill] sm:$0xff]  ;;  %v3578_v43 = vld [vmem:[#allocation55_spill] sm:$0xff] }
  0xdb   : > { %v713_v48 = vadd.f32 %v705_v18, %v633_v35  ;;  %v747_v62 = vadd.f32 %v739_v4, %v653_v59  ;;  %v819_v22 = vmul.f32 %v3575_v27, %v3574_v32  ;;  %v3576_v55 = vld [vmem:[#allocation53_spill] sm:$0xff]  ;;  %v3577_v57 = vld [vmem:[#allocation46_spill] sm:$0xff]  ;;  %v859_v36 = vmul.f32 %v3578_v43, %v2732_v53  ;;  %v2748_v37 = vld [vmem:[#allocation2 + $0xc4] sm:$0xff] }
  0xdc   : > { %v767_v63 = vadd.f32 %v759_v0, %v673_v8  ;;  %v787_v23 = vadd.f32 %v779_v49, %v693_v7  ;;  %v839_v50 = vmul.f32 %v3577_v57, %v3576_v55  ;;  %3579 = vst [vmem:[#allocation81_spill] sm:$0xff] %v2748_v37  ;;  %v3580_v18 = vld [vmem:[#allocation56_spill] sm:$0xff]  ;;  %v3581_v35 = vld [vmem:[#allocation25_spill] sm:$0xff]  ;;  %v3582_v51 = vld [vmem:[#allocation58_spill] sm:$0xff]  ;;  %v933_v7 = vmul.f32 %v3529_v10, %v3530_v14 }
  0xdd   : > { %v807_v3 = vadd.f32 %v799_v33, %v713_v48  ;;  %v827_v11 = vadd.f32 %v819_v22, %v747_v62  ;;  %v893_v59 = vmul.f32 %v3581_v35, %v3580_v18  ;;  %v2752_v4 = vld [vmem:[#allocation2 + $0x74] sm:$0xff]  ;;  %v953_v0 = vmul.f32 %v3531_v44, %v3532_v56  ;;  %v3585_v35 = vld [vmem:[#allocation63_spill] sm:$0xff] }
  0xde   : > { %v913_v27 = vmul.f32 %v2752_v4, %v3582_v51  ;;  %v847_v8 = vadd.f32 %v839_v50, %v767_v63  ;;  %v867_v49 = vadd.f32 %v859_v36, %v787_v23  ;;  %v3583_v62 = vld [vmem:[#allocation61_spill] sm:$0xff]  ;;  %v3586_v51 = vld [vmem:[#allocation64_spill] sm:$0xff] }
  0xdf   : > { %v901_v48 = vadd.f32 %v893_v59, %v807_v3  ;;  %v973_v33 = vmul.f32 %v3583_v62, %v3534_v24  ;;  %v3584_v43 = vld [vmem:[#allocation5_spill] sm:$0xff]  ;;  %v1013_v63 = vmul.f32 %v3586_v51, %v2748_v37  ;;  %v2766_v23 = vld [vmem:[#allocation2 + $0xc5] sm:$0xff]  ;;  %v1127_v51 = vmul.f32 %v3539_v26, %v3540_v1 }
  0xe0   : > { %v921_v22 = vadd.f32 %v913_v27, %v827_v11  ;;  %v993_v18 = vmul.f32 %v3585_v35, %v3584_v43  ;;  %v941_v57 = vadd.f32 %v933_v7, %v847_v8  ;;  %v961_v53 = vadd.f32 %v953_v0, %v867_v49  ;;  %v3587_v50 = vld [vmem:[#allocation65_spill] sm:$0xff]  ;;  %v3589_v27 = vld [vmem:[#allocation66_spill] sm:$0xff] }
  0xe1   : > { %v1047_v14 = vmul.f32 %v2635_v5, %v3587_v50  ;;  %v981_v36 = vadd.f32 %v973_v33, %v901_v48  ;;  %v2770_v3 = vld [vmem:[#allocation2 + $0x75] sm:$0xff]  ;;  %v2784_v50 = vld [vmem:[#allocation2 + $0xc6] sm:$0xff] }
  0xe2   : > { %v1001_v44 = vadd.f32 %v993_v18, %v921_v22  ;;  %3588 = vst [vmem:[#allocation82_spill] sm:$0xff] %v2770_v3  ;;  %v1067_v11 = vmul.f32 %v2770_v3, %v3589_v27  ;;  %v3590_v59 = vld [vmem:[#allocation69_spill] sm:$0xff]  ;;  %v1021_v8 = vadd.f32 %v1013_v63, %v941_v57  ;;  %v3591_v7 = vld [vmem:[#allocation70_spill] sm:$0xff]  ;;  %v3592_v18 = vld [vmem:[#allocation72_spill] sm:$0xff] }
  0xe3   : > { %v1087_v35 = vmul.f32 %v3590_v59, %v3488_v45  ;;  %v1055_v49 = vadd.f32 %v1047_v14, %v961_v53  ;;  %v1107_v0 = vmul.f32 %v3591_v7, %v3538_v52  ;;  %v1147_v48 = vmul.f32 %v3592_v18, %v2632_v12  ;;  %v3593_v22 = vld [vmem:[#allocation74_spill] sm:$0xff] }
  0xe4   : > { %v1075_v37 = vadd.f32 %v1067_v11, %v981_v36  ;;  %v1167_v33 = vmul.f32 %v3593_v22, %v2766_v23  ;;  %v1201_v45 = vmul.f32 %v2652_v39, %v3544_v6  ;;  %v2788_v53 = vld [vmem:[#allocation2 + $0x76] sm:$0xff]  ;;  %v1261_v14 = vmul.f32 %v3498_v40, %v2404_v42 }
  0xe5   : > { %v1095_v5 = vadd.f32 %v1087_v35, %v1001_v44  ;;  %v1115_v27 = vadd.f32 %v1107_v0, %v1021_v8  ;;  %v1135_v3 = vadd.f32 %v1127_v51, %v1055_v49  ;;  %v1221_v57 = vmul.f32 %v2788_v53, %v3545_v41  ;;  %v3594_v11 = vld [vmem:[#allocation41_spill] sm:$0xff]  ;;  %v3595_v8 = vld [vmem:[#allocation84_spill] sm:$0xff]  ;;  %v3596_v0 = vld [vmem:[#allocation42_spill] sm:$0xff] }
  0xe6   : > { %v1155_v63 = vadd.f32 %v1147_v48, %v1075_v37  ;;  %v1241_v35 = vmul.f32 %v3546_v25, %v3499_v2  ;;  %v1281_v49 = vmul.f32 %v3595_v8, %v3594_v11  ;;  %v3597_v39 = vld [vmem:[#allocation85_spill] sm:$0xff]  ;;  %v3598_v41 = vld [vmem:[#allocation11_spill] sm:$0xff] }
  0xe7   : > { %v1175_v44 = vadd.f32 %v1167_v33, %v1095_v5  ;;  %v1209_v36 = vadd.f32 %v1201_v45, %v1115_v27  ;;  %v1229_v51 = vadd.f32 %v1221_v57, %v1135_v3  ;;  %v1301_v6 = vmul.f32 %v3597_v39, %v3596_v0  ;;  %v3599_v5 = vld [vmem:[#allocation6_spill] sm:$0xff]  ;;  %v1558_v25 = vld [vmem:[#allocation2 + $0x80] sm:$0xff]  ;;  %v3601_v40 = vld [vmem:[#allocation9_spill] sm:$0xff] }
  0xe8   : > { %v1249_v22 = vadd.f32 %v1241_v35, %v1155_v63  ;;  %v1321_v37 = vmul.f32 %v3598_v41, %v2784_v50  ;;  %v310_v48 = vmul.f32 %v2673_v38, %v3599_v5  ;;  %v322_v27 = vmul.f32 %v1558_v25, %v3548_v47  ;;  %v3600_v57 = vld [vmem:[#allocation23_spill] sm:$0xff]  ;;  %v3602_v63 = vld [vmem:[#allocation13_spill] sm:$0xff] }
  0xe9   : > { %v1269_v18 = vadd.f32 %v1261_v14, %v1175_v44  ;;  %v1289_v2 = vadd.f32 %v1281_v49, %v1209_v36  ;;  %v1309_v33 = vadd.f32 %v1301_v6, %v1229_v51  ;;  %v334_v3 = vmul.f32 %v3447_v34, %v3549_v19  ;;  %v3603_v44 = vld [vmem:[#allocation47_spill] sm:$0xff]  ;;  %v420_v14 = vld [vmem:[#allocation2 + $0xd1] sm:$0xff] }
  0xea   : > { %v1329_v45 = vadd.f32 %v1321_v37, %v1249_v22  ;;  %v346_v11 = vmul.f32 %v3601_v40, %v3600_v57  ;;  %v358_v35 = vmul.f32 %v3603_v44, %v3602_v63  ;;  %v432_v41 = vmul.f32 %v2692_v13, %v3555_v30  ;;  %v1559_v25 = vld [vmem:[#allocation2 + $0x81] sm:$0xff]  ;;  %v3605_v13 = vld [vmem:[#allocation26_spill] sm:$0xff] }
  0xeb   : > { %v1345_v38 = vadd.f32 %v1309_v33, %v1289_v2  ;;  %v386_v6 = vadd.f32 %v2685_v16, %v322_v27  ;;  %v406_v36 = vadd.f32 %v2560_v61, %v334_v3  ;;  %v3604_v47 = vld [vmem:[#allocation19_spill] sm:$0xff]  ;;  %v472_v40 = vmul.f32 %v3332_v9, %v2328_v60  ;;  %v574_v60 = vld [vmem:[#allocation2 + $0xd2] sm:$0xff]  ;;  %v3609_v27 = vld [vmem:[#allocation48_spill] sm:$0xff] }
  0xec   : > { %v452_v51 = vmul.f32 %v1559_v25, %v3604_v47  ;;  %v1337_v34 = vadd.f32 %v1329_v45, %v1269_v18  ;;  %v366_v19 = vadd.f32 %v358_v35, %v310_v48  ;;  %v440_v22 = vadd.f32 %v432_v41, %v346_v11  ;;  %v3606_v18 = vld [vmem:[#allocation29_spill] sm:$0xff]  ;;  %v3607_v48 = vld [vmem:[#allocation12_spill] sm:$0xff]  ;;  %v3616_v25 = vld [vmem:[#allocation3_spill] sm:$0xff] }
  0xed   : > { %v492_v49 = vmul.f32 %v3335_v29, %v2436_v15  ;;  %v512_v30 = vmul.f32 %v3337_v20, %v2572_v46  ;;  %v532_v16 = vmul.f32 %v3399_v58, %v2687_v54  ;;  %v552_v61 = vmul.f32 %v3605_v13, %v420_v14  ;;  %v1560_v33 = vld [vmem:[#allocation2 + $0x82] sm:$0xff]  ;;  %v3608_v29 = vld [vmem:[#allocation30_spill] sm:$0xff]  ;;  %v3611_v3 = vld [vmem:[#allocation17_spill] sm:$0xff] }
  0xee   : > { %v1353_v37 = vadd.f32 %v1345_v38, %v1337_v34  ;;  %v460_v5 = vadd.f32 %v452_v51, %v366_v19  ;;  %v480_v2 = vadd.f32 %v472_v40, %v386_v6  ;;  %v586_v41 = vmul.f32 %v3607_v48, %v3606_v18  ;;  %v3610_v20 = vld [vmem:[#allocation31_spill] sm:$0xff]  ;;  %v3612_v57 = vld [vmem:[#allocation20_spill] sm:$0xff]  ;;  %v3614_v38 = vld [vmem:[#allocation50_spill] sm:$0xff] }
  0xef   : > { %v500_v11 = vadd.f32 %v492_v49, %v406_v36  ;;  %v520_v9 = vadd.f32 %v512_v30, %v440_v22  ;;  %v606_v15 = vmul.f32 %v1560_v33, %v3608_v29  ;;  %v626_v46 = vmul.f32 %v3610_v20, %v3609_v27  ;;  %v3613_v63 = vld [vmem:[#allocation32_spill] sm:$0xff]  ;;  %v3615_v6 = vld [vmem:[#allocation33_spill] sm:$0xff]  ;;  %v3617_v47 = vld [vmem:[#allocation34_spill] sm:$0xff] }
  0xf0   : > { %v1368_v58 = vadd.f32 %v3611_v3, %v1353_v37  ;;  %v540_v54 = vadd.f32 %v532_v16, %v460_v5  ;;  %v560_v45 = vadd.f32 %v552_v61, %v480_v2  ;;  %v646_v44 = vmul.f32 %v3613_v63, %v3612_v57  ;;  %v3618_v22 = vld [vmem:[#allocation35_spill] sm:$0xff]  ;;  %v728_v49 = vld [vmem:[#allocation2 + $0xd3] sm:$0xff]  ;;  %v3619_v30 = vld [vmem:[#allocation52_spill] sm:$0xff] }
  0xf1   : > { %v594_v35 = vadd.f32 %v586_v41, %v500_v11  ;;  %v614_v14 = vadd.f32 %v606_v15, %v520_v9  ;;  %v666_v36 = vmul.f32 %v3615_v6, %v3614_v38  ;;  %v686_v51 = vmul.f32 %v3617_v47, %v3616_v25  ;;  %v3620_v37 = vld [vmem:[#allocation39_spill] sm:$0xff]  ;;  %v3621_v41 = vld [vmem:[#allocation44_spill] sm:$0xff]  ;;  %v3622_v9 = vld [vmem:[#allocation45_spill] sm:$0xff] }
  0xf2   : > { %1376 = vst [vmem:[%s2119_s11 + $0x30] sm:$0xff] %v1368_v58  ;;  %v634_v34 = vadd.f32 %v626_v46, %v540_v54  ;;  %v654_v19 = vadd.f32 %v646_v44, %v560_v45  ;;  %v706_v40 = vmul.f32 %v3618_v22, %v574_v60  ;;  %v740_v16 = vmul.f32 %v3619_v30, %v3566_v28  ;;  %v3623_v15 = vld [vmem:[#allocation80_spill] sm:$0xff]  ;;  %v3624_v28 = vld [vmem:[#allocation46_spill] sm:$0xff]  ;;  %v3625_v20 = vld [vmem:[#allocation55_spill] sm:$0xff] }
  0xf3   : > { %v674_v13 = vadd.f32 %v666_v36, %v594_v35  ;;  %v694_v61 = vadd.f32 %v686_v51, %v614_v14  ;;  %v760_v5 = vmul.f32 %v3571_v17, %v3620_v37  ;;  %v780_v2 = vmul.f32 %v3573_v21, %v3570_v31  ;;  %v882_v54 = vld [vmem:[#allocation2 + $0xd4] sm:$0xff]  ;;  %v3626_v45 = vld [vmem:[#allocation56_spill] sm:$0xff]  ;;  %v3630_v47 = vld [vmem:[#allocation63_spill] sm:$0xff] }
  0xf4   : > { %v714_v18 = vadd.f32 %v706_v40, %v634_v34  ;;  %v748_v48 = vadd.f32 %v740_v16, %v654_v19  ;;  %v800_v11 = vmul.f32 %v3621_v41, %v3574_v32  ;;  %v820_v60 = vmul.f32 %v3622_v9, %v3576_v55  ;;  %v1561_v21 = vld [vmem:[#allocation2 + $0x84] sm:$0xff]  ;;  %v3627_v57 = vld [vmem:[#allocation58_spill] sm:$0xff]  ;;  %v3629_v25 = vld [vmem:[#allocation81_spill] sm:$0xff] }
  0xf5   : > { %v768_v33 = vadd.f32 %v760_v5, %v674_v13  ;;  %v788_v29 = vadd.f32 %v780_v2, %v694_v61  ;;  %v840_v27 = vmul.f32 %v3624_v28, %v3623_v15  ;;  %v860_v46 = vmul.f32 %v3625_v20, %v728_v49  ;;  %v3628_v35 = vld [vmem:[#allocation60_spill] sm:$0xff]  ;;  %v1036_v40 = vld [vmem:[#allocation2 + $0xd5] sm:$0xff]  ;;  %v3637_v28 = vld [vmem:[#allocation75_spill] sm:$0xff] }
  0xf6   : > { %v808_v58 = vadd.f32 %v800_v11, %v714_v18  ;;  %v828_v17 = vadd.f32 %v820_v60, %v748_v48  ;;  %v894_v31 = vmul.f32 %v2752_v4, %v3626_v45  ;;  %v914_v63 = vmul.f32 %v1561_v21, %v3627_v57  ;;  %v3631_v19 = vld [vmem:[#allocation64_spill] sm:$0xff]  ;;  %v3632_v49 = vld [vmem:[#allocation65_spill] sm:$0xff]  ;;  %v3633_v30 = vld [vmem:[#allocation82_spill] sm:$0xff] }
  0xf7   : > { %v848_v32 = vadd.f32 %v840_v27, %v768_v33  ;;  %v868_v44 = vadd.f32 %v860_v46, %v788_v29  ;;  %v934_v55 = vmul.f32 %v3529_v10, %v3532_v56  ;;  %v954_v14 = vmul.f32 %v3628_v35, %v3534_v24  ;;  %v1562_v13 = vld [vmem:[#allocation2 + $0x85] sm:$0xff]  ;;  %v3634_v24 = vld [vmem:[#allocation66_spill] sm:$0xff]  ;;  %v3640_v45 = vld [vmem:[#allocation41_spill] sm:$0xff] }
  0xf8   : > { %v902_v38 = vadd.f32 %v894_v31, %v808_v58  ;;  %v922_v6 = vadd.f32 %v914_v63, %v828_v17  ;;  %v974_v36 = vmul.f32 %v3583_v62, %v3584_v43  ;;  %v994_v51 = vmul.f32 %v3630_v47, %v3629_v25  ;;  %v3635_v41 = vld [vmem:[#allocation72_spill] sm:$0xff]  ;;  %v3636_v9 = vld [vmem:[#allocation74_spill] sm:$0xff]  ;;  %v3642_v21 = vld [vmem:[#allocation11_spill] sm:$0xff] }
  0xf9   : > { %v942_v4 = vadd.f32 %v934_v55, %v848_v32  ;;  %v962_v34 = vadd.f32 %v954_v14, %v868_v44  ;;  %v1014_v22 = vmul.f32 %v3631_v19, %v882_v54  ;;  %v1048_v16 = vmul.f32 %v3633_v30, %v3632_v49  ;;  %v1190_v15 = vld [vmem:[#allocation2 + $0xd6] sm:$0xff] }
  0xfa   : > { %v982_v56 = vadd.f32 %v974_v36, %v902_v38  ;;  %v1002_v10 = vadd.f32 %v994_v51, %v922_v6  ;;  %v1068_v61 = vmul.f32 %v1562_v13, %v3634_v24  ;;  %v1088_v37 = vmul.f32 %v3590_v59, %v3538_v52  ;;  %v1563_v59 = vld [vmem:[#allocation2 + $0x86] sm:$0xff]  ;;  %v3638_v27 = vld [vmem:[#allocation78_spill] sm:$0xff] }
  0xfb   : > { %v1022_v43 = vadd.f32 %v1014_v22, %v942_v4  ;;  %v1056_v62 = vadd.f32 %v1048_v16, %v962_v34  ;;  %v1108_v5 = vmul.f32 %v3591_v7, %v3540_v1  ;;  %v1128_v2 = vmul.f32 %v3539_v26, %v2632_v12  ;;  %v3639_v12 = vld [vmem:[#allocation79_spill] sm:$0xff] }
  0xfc   : > { %v1076_v18 = vadd.f32 %v1068_v61, %v982_v56  ;;  %v1096_v48 = vadd.f32 %v1088_v37, %v1002_v10  ;;  %v1148_v11 = vmul.f32 %v3635_v41, %v2766_v23  ;;  %v1168_v60 = vmul.f32 %v3636_v9, %v1036_v40 }
  0xfd   : > { %v1116_v33 = vadd.f32 %v1108_v5, %v1022_v43  ;;  %v1136_v29 = vadd.f32 %v1128_v2, %v1056_v62  ;;  %v1202_v52 = vmul.f32 %v2788_v53, %v3637_v28  ;;  %v1222_v20 = vmul.f32 %v1563_v59, %v3638_v27  ;;  %v3641_v53 = vld [vmem:[#allocation83_spill] sm:$0xff] }
  0xfe   : > { %v1156_v1 = vadd.f32 %v1148_v11, %v1076_v18  ;;  %v1176_v7 = vadd.f32 %v1168_v60, %v1096_v48  ;;  %v1242_v26 = vmul.f32 %v3639_v12, %v2404_v42  ;;  %v1282_v23 = vmul.f32 %v3595_v8, %v3596_v0 }
  0xff   : > { %v1210_v46 = vadd.f32 %v1202_v52, %v1116_v33  ;;  %v1230_v58 = vadd.f32 %v1222_v20, %v1136_v29  ;;  %v1302_v17 = vmul.f32 %v3597_v39, %v2784_v50  ;;  %v1262_v31 = vmul.f32 %v3641_v53, %v3640_v45 }
 0x100   : > { %v1250_v54 = vadd.f32 %v1242_v26, %v1156_v1  ;;  %v1322_v57 = vmul.f32 %v3642_v21, %v1190_v15 }
 0x101   : > { %v1290_v63 = vadd.f32 %v1282_v23, %v1210_v46  ;;  %v1310_v32 = vadd.f32 %v1302_v17, %v1230_v58  ;;  %v1270_v44 = vadd.f32 %v1262_v31, %v1176_v7 }
 0x102   : > { %v1330_v55 = vadd.f32 %v1322_v57, %v1250_v54 }
 0x103   : > { %v1346_v35 = vadd.f32 %v1310_v32, %v1290_v63 }
 0x104   : > { %v1338_v42 = vadd.f32 %v1330_v55, %v1270_v44 }
 0x106   : > { %v1354_v14 = vadd.f32 %v1346_v35, %v1338_v42 }
 0x108   : > { %v1369_v38 = vadd.f32 %v3611_v3, %v1354_v14 }
 0x10a   : > { %1377 = vst [vmem:[%s2119_s11 + $0x38] sm:$0xff] %v1369_v38 }
 0x10b PF: > { %s13_s14 = sadd.s32 1, %s1586_s14   ;;  %s3643_s12 = smov %s1582_s13 }
 0x10c   : > { %p10_p5 = scmp.ge.s32.totalorder %s13_s14, 4   ;;  %s3644_s13 = smov %s3646_s15 }
 0x10e   :  { %12 = sbr.rel (!%p10_p5) target bundleno = 2 (0x2), region = 69 }

</bundles_post_ra>
